<compile_context>
chip_gen: v7x
topology: tpu7x:2x2x1
jax: 0.10.0
libtpu: 0.0.40
codegen_flags: <defaults>
</compile_context>

<pallas_src>
import functools

import jax
import jax.numpy as jnp
import numpy as np
from jax.experimental import pallas as pl
from jax.experimental.pallas import tpu as pltpu

_LN_EPS = 1e-5
_C1 = 4               # first_layer out channels  (nn.Conv2d(3, 4, 3, 1, 1))
_CFP = 10             # conv_fp out channels      (nn.Conv2d(3, 10, 3, 1, 1))
_CS = _C1 + _CFP      # stacked (conv_img | Fp) intermediate channels = 14


def _round_up(x, m):
    return (x + m - 1) // m * m


# ----------------------------------------------------------------------------
# Fused kernel: LayerNorm + all five 3x3 convs + sigmoid gate + SPD combine.
# One grid step processes `Bblk` batch samples; every intermediate stays in
# VMEM / vregs.  All convs are tap-wise accumulated (no materialized im2col).
# ----------------------------------------------------------------------------
def _soft_spd_norm_kernel(masks_ref, f_ref, m_ref, img_ref, ln_ref,
                          w_if_ref, b_if_ref, w_gbo_ref, b_gbo_ref, w_of_ref,
                          o_ref, *, H, W, C, Bblk):
    HW = H * W
    Cg = _round_up(C, 8)            # per-group row count in the fused gbo weight
    # Tap offsets in the flattened row-major spatial index (tap-major order,
    # matching the (9, Cout, Cin) host-side weight packing).
    offs = tuple(oy * W + ox for oy in (-1, 0, 1) for ox in (-1, 0, 1))

    # ---- hoisted once per grid step, shared by all Bblk samples -------------
    mask_v = [masks_ref[k] for k in range(9)]           # each (1, HW)
    w_if = [w_if_ref[k] for k in range(9)]              # each (_CS, 3)
    w_gbo = [w_gbo_ref[k] for k in range(9)]            # each (3*Cg, _CS)
    w_of = [w_of_ref[k] for k in range(9)]              # each (C, C)
    b_if = b_if_ref[...]                                # (_CS, 1)
    b_gbo = b_gbo_ref[...]                              # (3*Cg, 1)
    lnw = ln_ref[0]                                     # (C, HW)
    lnb = ln_ref[1]                                     # (C, HW)
    relu_rows = jax.lax.broadcasted_iota(jnp.int32, (_CS, HW), 0) < _C1

    def tap_conv(x, w_taps):
        # 3x3/s1/p1 conv of x:(Cin, HW) as 9 accumulated (Cout,Cin)@(Cin,HW)
        # matmuls; "SAME" zero padding comes from the precomputed tap masks.
        acc = jnp.dot(w_taps[4], x, preferred_element_type=jnp.float32)
        for k, off in enumerate(offs):
            if off == 0:
                continue
            shifted = pltpu.roll(x, (-off) % HW, axis=1) * mask_v[k]
            acc = acc + jnp.dot(w_taps[k], shifted,
                                preferred_element_type=jnp.float32)
        return acc

    def one_sample(b, carry):
        f = f_ref[b]                                    # (C, HW)
        img = img_ref[b]                                # (3, HW)
        m = m_ref[b]                                    # (1, HW)

        # --- LayerNorm([C,H,W]) in one elementwise pass: y = f*scale + shift
        n = float(C * HW)
        s1 = jnp.sum(f)
        s2 = jnp.sum(f * f)
        mean = s1 / n
        var = s2 / n - mean * mean
        scale = lnw * jax.lax.rsqrt(var + _LN_EPS)
        shift = lnb - mean * scale
        normalized = f * scale + shift                  # (C, HW)

        # --- conv1(img)+ReLU and conv_fp(img), fused -> stacked s (14, HW) ---
        s_pre = tap_conv(img, w_if) + b_if
        s = jnp.where(relu_rows, jnp.maximum(s_pre, 0.0), s_pre)

        # --- gamma, beta and the Fp-half of conv_fp_fin share s's taps -------
        gbo = tap_conv(s, w_gbo) + b_gbo                # (3*Cg, HW)
        o2f = tap_conv(f, w_of)                         # (C, HW), f_in-half
        gamma = gbo[0:C]
        beta = gbo[Cg:Cg + C]
        out2 = gbo[2 * Cg:2 * Cg + C] + o2f             # b_fin already in b_gbo

        # --- sigmoid gate + soft mask + SPD combine ---------------------------
        Mh = jnp.where(m > 0.0, 1.0, m)                 # M[mask > 0] = 1
        d_soft = jax.nn.sigmoid(out2) * (1.0 - Mh) + Mh
        o_ref[b] = normalized * (d_soft * gamma) + beta * d_soft
        return carry

    jax.lax.fori_loop(0, Bblk, one_sample, 0, unroll=True)


# ----------------------------------------------------------------------------
# Host-side packing helpers.
# ----------------------------------------------------------------------------
def _tap_masks(H, W):
    """(9, 1, H*W) f32 validity masks for the 3x3 taps (tap-major order)."""
    p = np.arange(H * W)
    y, x = p // W, p % W
    masks = np.zeros((9, 1, H * W), np.float32)
    k = 0
    for oy in (-1, 0, 1):
        for ox in (-1, 0, 1):
            valid = (y + oy >= 0) & (y + oy < H) & (x + ox >= 0) & (x + ox < W)
            masks[k, 0] = valid.astype(np.float32)
            k += 1
    return jnp.asarray(masks)


def _taps(w):
    """(Cout, Cin, 3, 3) PyTorch OIHW -> (9, Cout, Cin), tap-major."""
    cout, cin = w.shape[0], w.shape[1]
    return jnp.transpose(w, (2, 3, 0, 1)).reshape(9, cout, cin)


def _pad_rows(w, rows):
    """Zero-pad the leading (Cout) dim to `rows`."""
    return jnp.pad(w, ((0, rows - w.shape[0]),) + ((0, 0),) * (w.ndim - 1))


def _pick_batch_block(B):
    """Largest divisor of B (<=4) that still leaves >=2 grid steps."""
    for d in (4, 3, 2, 1):
        if B % d == 0 and B // d >= 2:
            return d
    return 1


# ----------------------------------------------------------------------------
# Full SoftSPDNorm forward: one fused pallas_call.
# ----------------------------------------------------------------------------
def soft_spd_norm(params, f_in, mask, img):
    """f_in: (B,C,H,W), mask: (B,1,H,W), img: (B,3,H,W) — PyTorch NCHW."""
    B, C, H, W = f_in.shape
    HW = H * W
    Cg = _round_up(C, 8)
    Bblk = _pick_batch_block(B)

    # NCHW -> (B, C, H*W) is a pure row-major view (no transposes).
    f = f_in.reshape(B, C, HW)
    m = mask.reshape(B, 1, HW)
    im = img.reshape(B, 3, HW)

    masks = _tap_masks(H, W)                                     # (9, 1, HW)
    ln = jnp.stack([params["ln_w"].reshape(C, HW),
                    params["ln_b"].reshape(C, HW)])              # (2, C, HW)

    # conv1 + conv_fp fused over the img taps.
    w_if = _taps(jnp.concatenate([params["w1"], params["w_fp"]], axis=0))
    b_if = jnp.concatenate([params["b1"], params["b_fp"]]).reshape(-1, 1)

    # gamma + beta + Fp-half of conv_fp_fin fused over the taps of the stacked
    # (conv_img | Fp) intermediate: zero columns over ignored input channels,
    # zero rows to pad each Cout group to a sublane multiple of 8.
    zg = jnp.zeros((C, _CFP, 3, 3), jnp.float32)
    zo = jnp.zeros((C, _C1, 3, 3), jnp.float32)
    w_gamma_s = jnp.concatenate([params["w_gamma"], zg], axis=1)       # (C,14,3,3)
    w_beta_s = jnp.concatenate([params["w_beta"], zg], axis=1)
    w_o2s = jnp.concatenate([zo, params["w_fin"][:, :_CFP]], axis=1)   # (C,14,3,3)
    w_gbo = _taps(jnp.concatenate([_pad_rows(w_gamma_s, Cg),
                                   _pad_rows(w_beta_s, Cg),
                                   _pad_rows(w_o2s, Cg)], axis=0))     # (9,3Cg,14)
    b_gbo = jnp.concatenate([_pad_rows(params["b_gamma"], Cg),
                             _pad_rows(params["b_beta"], Cg),
                             _pad_rows(params["b_fin"], Cg)]).reshape(-1, 1)

    # f_in-half of conv_fp_fin (its bias already lives in b_gbo's third group).
    w_of = _taps(params["w_fin"][:, _CFP:])                            # (9, C, C)

    def resident(a):
        nd = a.ndim
        return pl.BlockSpec(a.shape, lambda b, _n=nd: (0,) * _n)

    def per_block(ch):
        return pl.BlockSpec((Bblk, ch, HW), lambda b: (b, 0, 0))

    kern = functools.partial(_soft_spd_norm_kernel, H=H, W=W, C=C, Bblk=Bblk)

    out = pl.pallas_call(
        kern,
        out_shape=jax.ShapeDtypeStruct((B, C, HW), jnp.float32),
        grid=(B // Bblk,),
        in_specs=[
            resident(masks), per_block(C), per_block(1), per_block(3),
            resident(ln),
            resident(w_if), resident(b_if),
            resident(w_gbo), resident(b_gbo),
            resident(w_of),
        ],
        out_specs=per_block(C),
        compiler_params=pltpu.CompilerParams(
            dimension_semantics=("parallel",),          # v7x: steps split over TCs
            vmem_limit_bytes=32 * 1024 * 1024),
    )(masks, f, m, im, ln, w_if, b_if, w_gbo, b_gbo, w_of)
    return out.reshape(B, C, H, W)


# ----------------------------------------------------------------------------
# Pure-JAX reference (NCHW) for validation.
# ----------------------------------------------------------------------------
def reference(params, f_in, mask, img):
    def conv(x, w, b):
        y = jax.lax.conv_general_dilated(
            x, w, (1, 1), "SAME",
            dimension_numbers=("NCHW", "OIHW", "NCHW"),
            precision=jax.lax.Precision.HIGHEST)
        return y + b[None, :, None, None]

    mean = jnp.mean(f_in, axis=(1, 2, 3), keepdims=True)
    var = jnp.mean((f_in - mean) ** 2, axis=(1, 2, 3), keepdims=True)
    normalized = (f_in - mean) / jnp.sqrt(var + _LN_EPS)
    normalized = normalized * params["ln_w"][None] + params["ln_b"][None]

    conv_img = jax.nn.relu(conv(img, params["w1"], params["b1"]))
    gamma = conv(conv_img, params["w_gamma"], params["b_gamma"])
    beta = conv(conv_img, params["w_beta"], params["b_beta"])
    M = jnp.where(mask > 0, 1.0, mask)
    fp = conv(img, params["w_fp"], params["b_fp"])
    out2 = conv(jnp.concatenate([fp, f_in], axis=1),
                params["w_fin"], params["b_fin"])
    out3 = jax.nn.sigmoid(out2)
    d_soft = out3 * (1.0 - M) + M
    return normalized * (d_soft * gamma) + beta * d_soft


if __name__ == "__main__":
    def run_case(B, C, H, W, seed):
        key = jax.random.PRNGKey(seed)
        ks = jax.random.split(key, 16)

        def winit(k, shape, scale=0.1):
            return scale * jax.random.normal(k, shape, dtype=jnp.float32)

        params = {
            "ln_w": winit(ks[0], (C, H, W)) + 1.0,
            "ln_b": winit(ks[1], (C, H, W)),
            "w1": winit(ks[2], (_C1, 3, 3, 3)), "b1": winit(ks[3], (_C1,)),
            "w_gamma": winit(ks[4], (C, _C1, 3, 3)), "b_gamma": winit(ks[5], (C,)),
            "w_beta": winit(ks[6], (C, _C1, 3, 3)), "b_beta": winit(ks[7], (C,)),
            "w_fp": winit(ks[8], (_CFP, 3, 3, 3)), "b_fp": winit(ks[9], (_CFP,)),
            "w_fin": winit(ks[10], (C, _CFP + C, 3, 3)), "b_fin": winit(ks[11], (C,)),
        }

        f_in = jax.random.normal(ks[12], (B, C, H, W), dtype=jnp.float32)
        img = jax.random.normal(ks[13], (B, 3, H, W), dtype=jnp.float32)
        # mask: some strictly-positive entries (-> clamped to 1) and some zeros
        mask_vals = jax.random.uniform(ks[14], (B, 1, H, W), dtype=jnp.float32)
        mask_bits = (jax.random.uniform(ks[15], (B, 1, H, W)) > 0.5).astype(jnp.float32)
        mask = mask_vals * mask_bits

        out = jax.block_until_ready(soft_spd_norm(params, f_in, mask, img))
        ref = jax.block_until_ready(reference(params, f_in, mask, img))
        assert out.shape == (B, C, H, W)
        err = float(np.max(np.abs(np.asarray(out) - np.asarray(ref))))
        assert np.allclose(np.asarray(out), np.asarray(ref),
                           atol=2e-3, rtol=2e-3), f"max abs err = {err}"

    run_case(2, 4, 16, 16, 0)   # Bblk=1, grid=(2,)
    run_case(4, 4, 16, 16, 1)   # Bblk=2, grid=(2,) — exercises in-kernel batching
    print("KERNEL_OK")
</pallas_src>

<mosaic_0001>
module attributes {stable_mosaic.version = 11 : i64} {
  func.func @_soft_spd_norm_kernel(%arg0: i32, %arg1: memref<9x1x256xf32, #tpu.memory_space<vmem>>, %arg2: memref<1x4x256xf32, #tpu.memory_space<vmem>>, %arg3: memref<1x1x256xf32, #tpu.memory_space<vmem>>, %arg4: memref<1x3x256xf32, #tpu.memory_space<vmem>>, %arg5: memref<2x4x256xf32, #tpu.memory_space<vmem>>, %arg6: memref<9x14x3xf32, #tpu.memory_space<vmem>>, %arg7: memref<14x1xf32, #tpu.memory_space<vmem>>, %arg8: memref<9x24x14xf32, #tpu.memory_space<vmem>>, %arg9: memref<24x1xf32, #tpu.memory_space<vmem>>, %arg10: memref<9x4x4xf32, #tpu.memory_space<vmem>>, %arg11: memref<1x4x256xf32, #tpu.memory_space<vmem>>) attributes {dimension_semantics = [#tpu.dimension_semantics<parallel>], iteration_bounds = array<i64: 2>, scalar_prefetch = 0 : i64, scratch_operands = 0 : i64, tpu.core_type = #tpu.core_type<tc>, window_params = [{pipeline_mode = #tpu.pipeline_mode<synchronous>, transform_indices = @transform_0, window_bounds = array<i64: 9, 1, 256>}, {transform_indices = @transform_1, window_bounds = array<i64: 1, 4, 256>}, {transform_indices = @transform_2, window_bounds = array<i64: 1, 1, 256>}, {transform_indices = @transform_3, window_bounds = array<i64: 1, 3, 256>}, {pipeline_mode = #tpu.pipeline_mode<synchronous>, transform_indices = @transform_4, window_bounds = array<i64: 2, 4, 256>}, {pipeline_mode = #tpu.pipeline_mode<synchronous>, transform_indices = @transform_5, window_bounds = array<i64: 9, 14, 3>}, {pipeline_mode = #tpu.pipeline_mode<synchronous>, transform_indices = @transform_6, window_bounds = array<i64: 14, 1>}, {pipeline_mode = #tpu.pipeline_mode<synchronous>, transform_indices = @transform_7, window_bounds = array<i64: 9, 24, 14>}, {pipeline_mode = #tpu.pipeline_mode<synchronous>, transform_indices = @transform_8, window_bounds = array<i64: 24, 1>}, {pipeline_mode = #tpu.pipeline_mode<synchronous>, transform_indices = @transform_9, window_bounds = array<i64: 9, 4, 4>}, {transform_indices = @transform_10, window_bounds = array<i64: 1, 4, 256>}]} {
    %c0 = arith.constant 0 : index
    %c0_0 = arith.constant 0 : index
    %c0_1 = arith.constant 0 : index
    %0 = vector.load %arg1[%c0, %c0_0, %c0_1] : memref<9x1x256xf32, #tpu.memory_space<vmem>>, vector<1x1x256xf32>
    %1 = vector.shape_cast %0 : vector<1x1x256xf32> to vector<1x256xf32>
    %c1 = arith.constant 1 : index
    %c0_2 = arith.constant 0 : index
    %c0_3 = arith.constant 0 : index
    %2 = vector.load %arg1[%c1, %c0_2, %c0_3] : memref<9x1x256xf32, #tpu.memory_space<vmem>>, vector<1x1x256xf32>
    %3 = vector.shape_cast %2 : vector<1x1x256xf32> to vector<1x256xf32>
    %c2 = arith.constant 2 : index
    %c0_4 = arith.constant 0 : index
    %c0_5 = arith.constant 0 : index
    %4 = vector.load %arg1[%c2, %c0_4, %c0_5] : memref<9x1x256xf32, #tpu.memory_space<vmem>>, vector<1x1x256xf32>
    %5 = vector.shape_cast %4 : vector<1x1x256xf32> to vector<1x256xf32>
    %c3 = arith.constant 3 : index
    %c0_6 = arith.constant 0 : index
    %c0_7 = arith.constant 0 : index
    %6 = vector.load %arg1[%c3, %c0_6, %c0_7] : memref<9x1x256xf32, #tpu.memory_space<vmem>>, vector<1x1x256xf32>
    %7 = vector.shape_cast %6 : vector<1x1x256xf32> to vector<1x256xf32>
    %c5 = arith.constant 5 : index
    %c0_8 = arith.constant 0 : index
    %c0_9 = arith.constant 0 : index
    %8 = vector.load %arg1[%c5, %c0_8, %c0_9] : memref<9x1x256xf32, #tpu.memory_space<vmem>>, vector<1x1x256xf32>
    %9 = vector.shape_cast %8 : vector<1x1x256xf32> to vector<1x256xf32>
    %c6 = arith.constant 6 : index
    %c0_10 = arith.constant 0 : index
    %c0_11 = arith.constant 0 : index
    %10 = vector.load %arg1[%c6, %c0_10, %c0_11] : memref<9x1x256xf32, #tpu.memory_space<vmem>>, vector<1x1x256xf32>
    %11 = vector.shape_cast %10 : vector<1x1x256xf32> to vector<1x256xf32>
    %c7 = arith.constant 7 : index
    %c0_12 = arith.constant 0 : index
    %c0_13 = arith.constant 0 : index
    %12 = vector.load %arg1[%c7, %c0_12, %c0_13] : memref<9x1x256xf32, #tpu.memory_space<vmem>>, vector<1x1x256xf32>
    %13 = vector.shape_cast %12 : vector<1x1x256xf32> to vector<1x256xf32>
    %c8 = arith.constant 8 : index
    %c0_14 = arith.constant 0 : index
    %c0_15 = arith.constant 0 : index
    %14 = vector.load %arg1[%c8, %c0_14, %c0_15] : memref<9x1x256xf32, #tpu.memory_space<vmem>>, vector<1x1x256xf32>
    %15 = vector.shape_cast %14 : vector<1x1x256xf32> to vector<1x256xf32>
    %c0_16 = arith.constant 0 : index
    %c0_17 = arith.constant 0 : index
    %c0_18 = arith.constant 0 : index
    %16 = vector.load %arg6[%c0_16, %c0_17, %c0_18] : memref<9x14x3xf32, #tpu.memory_space<vmem>>, vector<1x14x3xf32>
    %17 = vector.shape_cast %16 : vector<1x14x3xf32> to vector<14x3xf32>
    %c1_19 = arith.constant 1 : index
    %c0_20 = arith.constant 0 : index
    %c0_21 = arith.constant 0 : index
    %18 = vector.load %arg6[%c1_19, %c0_20, %c0_21] : memref<9x14x3xf32, #tpu.memory_space<vmem>>, vector<1x14x3xf32>
    %19 = vector.shape_cast %18 : vector<1x14x3xf32> to vector<14x3xf32>
    %c2_22 = arith.constant 2 : index
    %c0_23 = arith.constant 0 : index
    %c0_24 = arith.constant 0 : index
    %20 = vector.load %arg6[%c2_22, %c0_23, %c0_24] : memref<9x14x3xf32, #tpu.memory_space<vmem>>, vector<1x14x3xf32>
    %21 = vector.shape_cast %20 : vector<1x14x3xf32> to vector<14x3xf32>
    %c3_25 = arith.constant 3 : index
    %c0_26 = arith.constant 0 : index
    %c0_27 = arith.constant 0 : index
    %22 = vector.load %arg6[%c3_25, %c0_26, %c0_27] : memref<9x14x3xf32, #tpu.memory_space<vmem>>, vector<1x14x3xf32>
    %23 = vector.shape_cast %22 : vector<1x14x3xf32> to vector<14x3xf32>
    %c4 = arith.constant 4 : index
    %c0_28 = arith.constant 0 : index
    %c0_29 = arith.constant 0 : index
    %24 = vector.load %arg6[%c4, %c0_28, %c0_29] : memref<9x14x3xf32, #tpu.memory_space<vmem>>, vector<1x14x3xf32>
    %25 = vector.shape_cast %24 : vector<1x14x3xf32> to vector<14x3xf32>
    %c5_30 = arith.constant 5 : index
    %c0_31 = arith.constant 0 : index
    %c0_32 = arith.constant 0 : index
    %26 = vector.load %arg6[%c5_30, %c0_31, %c0_32] : memref<9x14x3xf32, #tpu.memory_space<vmem>>, vector<1x14x3xf32>
    %27 = vector.shape_cast %26 : vector<1x14x3xf32> to vector<14x3xf32>
    %c6_33 = arith.constant 6 : index
    %c0_34 = arith.constant 0 : index
    %c0_35 = arith.constant 0 : index
    %28 = vector.load %arg6[%c6_33, %c0_34, %c0_35] : memref<9x14x3xf32, #tpu.memory_space<vmem>>, vector<1x14x3xf32>
    %29 = vector.shape_cast %28 : vector<1x14x3xf32> to vector<14x3xf32>
    %c7_36 = arith.constant 7 : index
    %c0_37 = arith.constant 0 : index
    %c0_38 = arith.constant 0 : index
    %30 = vector.load %arg6[%c7_36, %c0_37, %c0_38] : memref<9x14x3xf32, #tpu.memory_space<vmem>>, vector<1x14x3xf32>
    %31 = vector.shape_cast %30 : vector<1x14x3xf32> to vector<14x3xf32>
    %c8_39 = arith.constant 8 : index
    %c0_40 = arith.constant 0 : index
    %c0_41 = arith.constant 0 : index
    %32 = vector.load %arg6[%c8_39, %c0_40, %c0_41] : memref<9x14x3xf32, #tpu.memory_space<vmem>>, vector<1x14x3xf32>
    %33 = vector.shape_cast %32 : vector<1x14x3xf32> to vector<14x3xf32>
    %c0_42 = arith.constant 0 : index
    %c0_43 = arith.constant 0 : index
    %c0_44 = arith.constant 0 : index
    %34 = vector.load %arg8[%c0_42, %c0_43, %c0_44] : memref<9x24x14xf32, #tpu.memory_space<vmem>>, vector<1x24x14xf32>
    %35 = vector.shape_cast %34 : vector<1x24x14xf32> to vector<24x14xf32>
    %c1_45 = arith.constant 1 : index
    %c0_46 = arith.constant 0 : index
    %c0_47 = arith.constant 0 : index
    %36 = vector.load %arg8[%c1_45, %c0_46, %c0_47] : memref<9x24x14xf32, #tpu.memory_space<vmem>>, vector<1x24x14xf32>
    %37 = vector.shape_cast %36 : vector<1x24x14xf32> to vector<24x14xf32>
    %c2_48 = arith.constant 2 : index
    %c0_49 = arith.constant 0 : index
    %c0_50 = arith.constant 0 : index
    %38 = vector.load %arg8[%c2_48, %c0_49, %c0_50] : memref<9x24x14xf32, #tpu.memory_space<vmem>>, vector<1x24x14xf32>
    %39 = vector.shape_cast %38 : vector<1x24x14xf32> to vector<24x14xf32>
    %c3_51 = arith.constant 3 : index
    %c0_52 = arith.constant 0 : index
    %c0_53 = arith.constant 0 : index
    %40 = vector.load %arg8[%c3_51, %c0_52, %c0_53] : memref<9x24x14xf32, #tpu.memory_space<vmem>>, vector<1x24x14xf32>
    %41 = vector.shape_cast %40 : vector<1x24x14xf32> to vector<24x14xf32>
    %c4_54 = arith.constant 4 : index
    %c0_55 = arith.constant 0 : index
    %c0_56 = arith.constant 0 : index
    %42 = vector.load %arg8[%c4_54, %c0_55, %c0_56] : memref<9x24x14xf32, #tpu.memory_space<vmem>>, vector<1x24x14xf32>
    %43 = vector.shape_cast %42 : vector<1x24x14xf32> to vector<24x14xf32>
    %c5_57 = arith.constant 5 : index
    %c0_58 = arith.constant 0 : index
    %c0_59 = arith.constant 0 : index
    %44 = vector.load %arg8[%c5_57, %c0_58, %c0_59] : memref<9x24x14xf32, #tpu.memory_space<vmem>>, vector<1x24x14xf32>
    %45 = vector.shape_cast %44 : vector<1x24x14xf32> to vector<24x14xf32>
    %c6_60 = arith.constant 6 : index
    %c0_61 = arith.constant 0 : index
    %c0_62 = arith.constant 0 : index
    %46 = vector.load %arg8[%c6_60, %c0_61, %c0_62] : memref<9x24x14xf32, #tpu.memory_space<vmem>>, vector<1x24x14xf32>
    %47 = vector.shape_cast %46 : vector<1x24x14xf32> to vector<24x14xf32>
    %c7_63 = arith.constant 7 : index
    %c0_64 = arith.constant 0 : index
    %c0_65 = arith.constant 0 : index
    %48 = vector.load %arg8[%c7_63, %c0_64, %c0_65] : memref<9x24x14xf32, #tpu.memory_space<vmem>>, vector<1x24x14xf32>
    %49 = vector.shape_cast %48 : vector<1x24x14xf32> to vector<24x14xf32>
    %c8_66 = arith.constant 8 : index
    %c0_67 = arith.constant 0 : index
    %c0_68 = arith.constant 0 : index
    %50 = vector.load %arg8[%c8_66, %c0_67, %c0_68] : memref<9x24x14xf32, #tpu.memory_space<vmem>>, vector<1x24x14xf32>
    %51 = vector.shape_cast %50 : vector<1x24x14xf32> to vector<24x14xf32>
    %c0_69 = arith.constant 0 : index
    %c0_70 = arith.constant 0 : index
    %c0_71 = arith.constant 0 : index
    %52 = vector.load %arg10[%c0_69, %c0_70, %c0_71] : memref<9x4x4xf32, #tpu.memory_space<vmem>>, vector<1x4x4xf32>
    %53 = vector.shape_cast %52 : vector<1x4x4xf32> to vector<4x4xf32>
    %c1_72 = arith.constant 1 : index
    %c0_73 = arith.constant 0 : index
    %c0_74 = arith.constant 0 : index
    %54 = vector.load %arg10[%c1_72, %c0_73, %c0_74] : memref<9x4x4xf32, #tpu.memory_space<vmem>>, vector<1x4x4xf32>
    %55 = vector.shape_cast %54 : vector<1x4x4xf32> to vector<4x4xf32>
    %c2_75 = arith.constant 2 : index
    %c0_76 = arith.constant 0 : index
    %c0_77 = arith.constant 0 : index
    %56 = vector.load %arg10[%c2_75, %c0_76, %c0_77] : memref<9x4x4xf32, #tpu.memory_space<vmem>>, vector<1x4x4xf32>
    %57 = vector.shape_cast %56 : vector<1x4x4xf32> to vector<4x4xf32>
    %c3_78 = arith.constant 3 : index
    %c0_79 = arith.constant 0 : index
    %c0_80 = arith.constant 0 : index
    %58 = vector.load %arg10[%c3_78, %c0_79, %c0_80] : memref<9x4x4xf32, #tpu.memory_space<vmem>>, vector<1x4x4xf32>
    %59 = vector.shape_cast %58 : vector<1x4x4xf32> to vector<4x4xf32>
    %c4_81 = arith.constant 4 : index
    %c0_82 = arith.constant 0 : index
    %c0_83 = arith.constant 0 : index
    %60 = vector.load %arg10[%c4_81, %c0_82, %c0_83] : memref<9x4x4xf32, #tpu.memory_space<vmem>>, vector<1x4x4xf32>
    %61 = vector.shape_cast %60 : vector<1x4x4xf32> to vector<4x4xf32>
    %c5_84 = arith.constant 5 : index
    %c0_85 = arith.constant 0 : index
    %c0_86 = arith.constant 0 : index
    %62 = vector.load %arg10[%c5_84, %c0_85, %c0_86] : memref<9x4x4xf32, #tpu.memory_space<vmem>>, vector<1x4x4xf32>
    %63 = vector.shape_cast %62 : vector<1x4x4xf32> to vector<4x4xf32>
    %c6_87 = arith.constant 6 : index
    %c0_88 = arith.constant 0 : index
    %c0_89 = arith.constant 0 : index
    %64 = vector.load %arg10[%c6_87, %c0_88, %c0_89] : memref<9x4x4xf32, #tpu.memory_space<vmem>>, vector<1x4x4xf32>
    %65 = vector.shape_cast %64 : vector<1x4x4xf32> to vector<4x4xf32>
    %c7_90 = arith.constant 7 : index
    %c0_91 = arith.constant 0 : index
    %c0_92 = arith.constant 0 : index
    %66 = vector.load %arg10[%c7_90, %c0_91, %c0_92] : memref<9x4x4xf32, #tpu.memory_space<vmem>>, vector<1x4x4xf32>
    %67 = vector.shape_cast %66 : vector<1x4x4xf32> to vector<4x4xf32>
    %c8_93 = arith.constant 8 : index
    %c0_94 = arith.constant 0 : index
    %c0_95 = arith.constant 0 : index
    %68 = vector.load %arg10[%c8_93, %c0_94, %c0_95] : memref<9x4x4xf32, #tpu.memory_space<vmem>>, vector<1x4x4xf32>
    %69 = vector.shape_cast %68 : vector<1x4x4xf32> to vector<4x4xf32>
    %c0_96 = arith.constant 0 : index
    %c0_97 = arith.constant 0 : index
    %70 = vector.load %arg7[%c0_96, %c0_97] : memref<14x1xf32, #tpu.memory_space<vmem>>, vector<14x1xf32>
    %c0_98 = arith.constant 0 : index
    %c0_99 = arith.constant 0 : index
    %71 = vector.load %arg9[%c0_98, %c0_99] : memref<24x1xf32, #tpu.memory_space<vmem>>, vector<24x1xf32>
    %c0_100 = arith.constant 0 : index
    %c0_101 = arith.constant 0 : index
    %c0_102 = arith.constant 0 : index
    %72 = vector.load %arg5[%c0_100, %c0_101, %c0_102] : memref<2x4x256xf32, #tpu.memory_space<vmem>>, vector<1x4x256xf32>
    %73 = vector.shape_cast %72 : vector<1x4x256xf32> to vector<4x256xf32>
    %c1_103 = arith.constant 1 : index
    %c0_104 = arith.constant 0 : index
    %c0_105 = arith.constant 0 : index
    %74 = vector.load %arg5[%c1_103, %c0_104, %c0_105] : memref<2x4x256xf32, #tpu.memory_space<vmem>>, vector<1x4x256xf32>
    %75 = vector.shape_cast %74 : vector<1x4x256xf32> to vector<4x256xf32>
    %76 = tpu.iota {dimensions = array<i32: 0>} : vector<14x256xi32>
    %c4_i32 = arith.constant 4 : i32
    %77 = vector.broadcast %c4_i32 : i32 to vector<14x256xi32>
    %78 = arith.cmpi slt, %76, %77 : vector<14x256xi32>
    %c0_i32 = arith.constant 0 : i32
    %79 = arith.index_cast %c0_i32 : i32 to index
    %c0_106 = arith.constant 0 : index
    %c0_107 = arith.constant 0 : index
    %80 = vector.load %arg2[%79, %c0_106, %c0_107] : memref<1x4x256xf32, #tpu.memory_space<vmem>>, vector<1x4x256xf32>
    %81 = vector.shape_cast %80 : vector<1x4x256xf32> to vector<4x256xf32>
    %82 = arith.index_cast %c0_i32 : i32 to index
    %c0_108 = arith.constant 0 : index
    %c0_109 = arith.constant 0 : index
    %83 = vector.load %arg4[%82, %c0_108, %c0_109] : memref<1x3x256xf32, #tpu.memory_space<vmem>>, vector<1x3x256xf32>
    %84 = vector.shape_cast %83 : vector<1x3x256xf32> to vector<3x256xf32>
    %85 = arith.index_cast %c0_i32 : i32 to index
    %c0_110 = arith.constant 0 : index
    %c0_111 = arith.constant 0 : index
    %86 = vector.load %arg3[%85, %c0_110, %c0_111] : memref<1x1x256xf32, #tpu.memory_space<vmem>>, vector<1x1x256xf32>
    %87 = vector.shape_cast %86 : vector<1x1x256xf32> to vector<1x256xf32>
    %88 = vector.shape_cast %81 : vector<4x256xf32> to vector<1x4x256xf32>
    %cst = arith.constant dense<0.000000e+00> : vector<1xf32>
    %89 = vector.multi_reduction <add>, %88, %cst [1, 2] : vector<1x4x256xf32> to vector<1xf32>
    %90 = vector.shape_cast %89 : vector<1xf32> to vector<1x1x1xf32>
    %91 = vector.extract %90[0, 0, 0] : f32 from vector<1x1x1xf32>
    %92 = arith.mulf %81, %81 : vector<4x256xf32>
    %93 = vector.shape_cast %92 : vector<4x256xf32> to vector<1x4x256xf32>
    %cst_112 = arith.constant dense<0.000000e+00> : vector<1xf32>
    %94 = vector.multi_reduction <add>, %93, %cst_112 [1, 2] : vector<1x4x256xf32> to vector<1xf32>
    %95 = vector.shape_cast %94 : vector<1xf32> to vector<1x1x1xf32>
    %96 = vector.extract %95[0, 0, 0] : f32 from vector<1x1x1xf32>
    %cst_113 = arith.constant 1.024000e+03 : f32
    %97 = arith.divf %91, %cst_113 : f32
    %cst_114 = arith.constant 1.024000e+03 : f32
    %98 = arith.divf %96, %cst_114 : f32
    %99 = arith.mulf %97, %97 : f32
    %100 = arith.subf %98, %99 : f32
    %cst_115 = arith.constant 9.99999974E-6 : f32
    %101 = arith.addf %100, %cst_115 : f32
    %102 = math.rsqrt %101 : f32
    %103 = vector.broadcast %102 : f32 to vector<4x256xf32>
    %104 = arith.mulf %73, %103 : vector<4x256xf32>
    %105 = vector.broadcast %97 : f32 to vector<4x256xf32>
    %106 = arith.mulf %105, %104 : vector<4x256xf32>
    %107 = arith.subf %75, %106 : vector<4x256xf32>
    %108 = arith.mulf %81, %104 : vector<4x256xf32>
    %109 = arith.addf %108, %107 : vector<4x256xf32>
    %cst_116 = arith.constant dense<0.000000e+00> : vector<14x256xf32>
    %110 = tpu.matmul %25, %84, %cst_116 {dimension_numbers = #tpu.dot_dimension_numbers<[1], [0], [0], [1], [0, 0, 1, 1], [], []>} : vector<14x3xf32>, vector<3x256xf32>, vector<14x256xf32> -> vector<14x256xf32>
    %c17_i32 = arith.constant 17 : i32
    %111 = tpu.dynamic_rotate %84 by %c17_i32 dim 1 : vector<3x256xf32>, i32 -> vector<3x256xf32>
    %112 = vector.broadcast %1 : vector<1x256xf32> to vector<3x256xf32>
    %113 = arith.mulf %111, %112 : vector<3x256xf32>
    %cst_117 = arith.constant dense<0.000000e+00> : vector<14x256xf32>
    %114 = tpu.matmul %17, %113, %cst_117 {dimension_numbers = #tpu.dot_dimension_numbers<[1], [0], [0], [1], [0, 0, 1, 1], [], []>} : vector<14x3xf32>, vector<3x256xf32>, vector<14x256xf32> -> vector<14x256xf32>
    %115 = arith.addf %110, %114 : vector<14x256xf32>
    %c16_i32 = arith.constant 16 : i32
    %116 = tpu.dynamic_rotate %84 by %c16_i32 dim 1 : vector<3x256xf32>, i32 -> vector<3x256xf32>
    %117 = vector.broadcast %3 : vector<1x256xf32> to vector<3x256xf32>
    %118 = arith.mulf %116, %117 : vector<3x256xf32>
    %cst_118 = arith.constant dense<0.000000e+00> : vector<14x256xf32>
    %119 = tpu.matmul %19, %118, %cst_118 {dimension_numbers = #tpu.dot_dimension_numbers<[1], [0], [0], [1], [0, 0, 1, 1], [], []>} : vector<14x3xf32>, vector<3x256xf32>, vector<14x256xf32> -> vector<14x256xf32>
    %120 = arith.addf %115, %119 : vector<14x256xf32>
    %c15_i32 = arith.constant 15 : i32
    %121 = tpu.dynamic_rotate %84 by %c15_i32 dim 1 : vector<3x256xf32>, i32 -> vector<3x256xf32>
    %122 = vector.broadcast %5 : vector<1x256xf32> to vector<3x256xf32>
    %123 = arith.mulf %121, %122 : vector<3x256xf32>
    %cst_119 = arith.constant dense<0.000000e+00> : vector<14x256xf32>
    %124 = tpu.matmul %21, %123, %cst_119 {dimension_numbers = #tpu.dot_dimension_numbers<[1], [0], [0], [1], [0, 0, 1, 1], [], []>} : vector<14x3xf32>, vector<3x256xf32>, vector<14x256xf32> -> vector<14x256xf32>
    %125 = arith.addf %120, %124 : vector<14x256xf32>
    %c1_i32 = arith.constant 1 : i32
    %126 = tpu.dynamic_rotate %84 by %c1_i32 dim 1 : vector<3x256xf32>, i32 -> vector<3x256xf32>
    %127 = vector.broadcast %7 : vector<1x256xf32> to vector<3x256xf32>
    %128 = arith.mulf %126, %127 : vector<3x256xf32>
    %cst_120 = arith.constant dense<0.000000e+00> : vector<14x256xf32>
    %129 = tpu.matmul %23, %128, %cst_120 {dimension_numbers = #tpu.dot_dimension_numbers<[1], [0], [0], [1], [0, 0, 1, 1], [], []>} : vector<14x3xf32>, vector<3x256xf32>, vector<14x256xf32> -> vector<14x256xf32>
    %130 = arith.addf %125, %129 : vector<14x256xf32>
    %c255_i32 = arith.constant 255 : i32
    %131 = tpu.dynamic_rotate %84 by %c255_i32 dim 1 : vector<3x256xf32>, i32 -> vector<3x256xf32>
    %132 = vector.broadcast %9 : vector<1x256xf32> to vector<3x256xf32>
    %133 = arith.mulf %131, %132 : vector<3x256xf32>
    %cst_121 = arith.constant dense<0.000000e+00> : vector<14x256xf32>
    %134 = tpu.matmul %27, %133, %cst_121 {dimension_numbers = #tpu.dot_dimension_numbers<[1], [0], [0], [1], [0, 0, 1, 1], [], []>} : vector<14x3xf32>, vector<3x256xf32>, vector<14x256xf32> -> vector<14x256xf32>
    %135 = arith.addf %130, %134 : vector<14x256xf32>
    %c241_i32 = arith.constant 241 : i32
    %136 = tpu.dynamic_rotate %84 by %c241_i32 dim 1 : vector<3x256xf32>, i32 -> vector<3x256xf32>
    %137 = vector.broadcast %11 : vector<1x256xf32> to vector<3x256xf32>
    %138 = arith.mulf %136, %137 : vector<3x256xf32>
    %cst_122 = arith.constant dense<0.000000e+00> : vector<14x256xf32>
    %139 = tpu.matmul %29, %138, %cst_122 {dimension_numbers = #tpu.dot_dimension_numbers<[1], [0], [0], [1], [0, 0, 1, 1], [], []>} : vector<14x3xf32>, vector<3x256xf32>, vector<14x256xf32> -> vector<14x256xf32>
    %140 = arith.addf %135, %139 : vector<14x256xf32>
    %c240_i32 = arith.constant 240 : i32
    %141 = tpu.dynamic_rotate %84 by %c240_i32 dim 1 : vector<3x256xf32>, i32 -> vector<3x256xf32>
    %142 = vector.broadcast %13 : vector<1x256xf32> to vector<3x256xf32>
    %143 = arith.mulf %141, %142 : vector<3x256xf32>
    %cst_123 = arith.constant dense<0.000000e+00> : vector<14x256xf32>
    %144 = tpu.matmul %31, %143, %cst_123 {dimension_numbers = #tpu.dot_dimension_numbers<[1], [0], [0], [1], [0, 0, 1, 1], [], []>} : vector<14x3xf32>, vector<3x256xf32>, vector<14x256xf32> -> vector<14x256xf32>
    %145 = arith.addf %140, %144 : vector<14x256xf32>
    %c239_i32 = arith.constant 239 : i32
    %146 = tpu.dynamic_rotate %84 by %c239_i32 dim 1 : vector<3x256xf32>, i32 -> vector<3x256xf32>
    %147 = vector.broadcast %15 : vector<1x256xf32> to vector<3x256xf32>
    %148 = arith.mulf %146, %147 : vector<3x256xf32>
    %cst_124 = arith.constant dense<0.000000e+00> : vector<14x256xf32>
    %149 = tpu.matmul %33, %148, %cst_124 {dimension_numbers = #tpu.dot_dimension_numbers<[1], [0], [0], [1], [0, 0, 1, 1], [], []>} : vector<14x3xf32>, vector<3x256xf32>, vector<14x256xf32> -> vector<14x256xf32>
    %150 = arith.addf %145, %149 : vector<14x256xf32>
    %151 = vector.broadcast %70 : vector<14x1xf32> to vector<14x256xf32>
    %152 = arith.addf %150, %151 : vector<14x256xf32>
    %cst_125 = arith.constant 0.000000e+00 : f32
    %153 = vector.broadcast %cst_125 : f32 to vector<14x256xf32>
    %154 = arith.maximumf %152, %153 : vector<14x256xf32>
    %155 = arith.select %78, %154, %152 : vector<14x256xi1>, vector<14x256xf32>
    %cst_126 = arith.constant dense<0.000000e+00> : vector<24x256xf32>
    %156 = tpu.matmul %43, %155, %cst_126 {dimension_numbers = #tpu.dot_dimension_numbers<[1], [0], [0], [1], [0, 0, 1, 1], [], []>} : vector<24x14xf32>, vector<14x256xf32>, vector<24x256xf32> -> vector<24x256xf32>
    %c17_i32_127 = arith.constant 17 : i32
    %157 = tpu.dynamic_rotate %155 by %c17_i32_127 dim 1 : vector<14x256xf32>, i32 -> vector<14x256xf32>
    %158 = vector.broadcast %1 : vector<1x256xf32> to vector<14x256xf32>
    %159 = arith.mulf %157, %158 : vector<14x256xf32>
    %cst_128 = arith.constant dense<0.000000e+00> : vector<24x256xf32>
    %160 = tpu.matmul %35, %159, %cst_128 {dimension_numbers = #tpu.dot_dimension_numbers<[1], [0], [0], [1], [0, 0, 1, 1], [], []>} : vector<24x14xf32>, vector<14x256xf32>, vector<24x256xf32> -> vector<24x256xf32>
    %161 = arith.addf %156, %160 : vector<24x256xf32>
    %c16_i32_129 = arith.constant 16 : i32
    %162 = tpu.dynamic_rotate %155 by %c16_i32_129 dim 1 : vector<14x256xf32>, i32 -> vector<14x256xf32>
    %163 = vector.broadcast %3 : vector<1x256xf32> to vector<14x256xf32>
    %164 = arith.mulf %162, %163 : vector<14x256xf32>
    %cst_130 = arith.constant dense<0.000000e+00> : vector<24x256xf32>
    %165 = tpu.matmul %37, %164, %cst_130 {dimension_numbers = #tpu.dot_dimension_numbers<[1], [0], [0], [1], [0, 0, 1, 1], [], []>} : vector<24x14xf32>, vector<14x256xf32>, vector<24x256xf32> -> vector<24x256xf32>
    %166 = arith.addf %161, %165 : vector<24x256xf32>
    %c15_i32_131 = arith.constant 15 : i32
    %167 = tpu.dynamic_rotate %155 by %c15_i32_131 dim 1 : vector<14x256xf32>, i32 -> vector<14x256xf32>
    %168 = vector.broadcast %5 : vector<1x256xf32> to vector<14x256xf32>
    %169 = arith.mulf %167, %168 : vector<14x256xf32>
    %cst_132 = arith.constant dense<0.000000e+00> : vector<24x256xf32>
    %170 = tpu.matmul %39, %169, %cst_132 {dimension_numbers = #tpu.dot_dimension_numbers<[1], [0], [0], [1], [0, 0, 1, 1], [], []>} : vector<24x14xf32>, vector<14x256xf32>, vector<24x256xf32> -> vector<24x256xf32>
    %171 = arith.addf %166, %170 : vector<24x256xf32>
    %c1_i32_133 = arith.constant 1 : i32
    %172 = tpu.dynamic_rotate %155 by %c1_i32_133 dim 1 : vector<14x256xf32>, i32 -> vector<14x256xf32>
    %173 = vector.broadcast %7 : vector<1x256xf32> to vector<14x256xf32>
    %174 = arith.mulf %172, %173 : vector<14x256xf32>
    %cst_134 = arith.constant dense<0.000000e+00> : vector<24x256xf32>
    %175 = tpu.matmul %41, %174, %cst_134 {dimension_numbers = #tpu.dot_dimension_numbers<[1], [0], [0], [1], [0, 0, 1, 1], [], []>} : vector<24x14xf32>, vector<14x256xf32>, vector<24x256xf32> -> vector<24x256xf32>
    %176 = arith.addf %171, %175 : vector<24x256xf32>
    %c255_i32_135 = arith.constant 255 : i32
    %177 = tpu.dynamic_rotate %155 by %c255_i32_135 dim 1 : vector<14x256xf32>, i32 -> vector<14x256xf32>
    %178 = vector.broadcast %9 : vector<1x256xf32> to vector<14x256xf32>
    %179 = arith.mulf %177, %178 : vector<14x256xf32>
    %cst_136 = arith.constant dense<0.000000e+00> : vector<24x256xf32>
    %180 = tpu.matmul %45, %179, %cst_136 {dimension_numbers = #tpu.dot_dimension_numbers<[1], [0], [0], [1], [0, 0, 1, 1], [], []>} : vector<24x14xf32>, vector<14x256xf32>, vector<24x256xf32> -> vector<24x256xf32>
    %181 = arith.addf %176, %180 : vector<24x256xf32>
    %c241_i32_137 = arith.constant 241 : i32
    %182 = tpu.dynamic_rotate %155 by %c241_i32_137 dim 1 : vector<14x256xf32>, i32 -> vector<14x256xf32>
    %183 = vector.broadcast %11 : vector<1x256xf32> to vector<14x256xf32>
    %184 = arith.mulf %182, %183 : vector<14x256xf32>
    %cst_138 = arith.constant dense<0.000000e+00> : vector<24x256xf32>
    %185 = tpu.matmul %47, %184, %cst_138 {dimension_numbers = #tpu.dot_dimension_numbers<[1], [0], [0], [1], [0, 0, 1, 1], [], []>} : vector<24x14xf32>, vector<14x256xf32>, vector<24x256xf32> -> vector<24x256xf32>
    %186 = arith.addf %181, %185 : vector<24x256xf32>
    %c240_i32_139 = arith.constant 240 : i32
    %187 = tpu.dynamic_rotate %155 by %c240_i32_139 dim 1 : vector<14x256xf32>, i32 -> vector<14x256xf32>
    %188 = vector.broadcast %13 : vector<1x256xf32> to vector<14x256xf32>
    %189 = arith.mulf %187, %188 : vector<14x256xf32>
    %cst_140 = arith.constant dense<0.000000e+00> : vector<24x256xf32>
    %190 = tpu.matmul %49, %189, %cst_140 {dimension_numbers = #tpu.dot_dimension_numbers<[1], [0], [0], [1], [0, 0, 1, 1], [], []>} : vector<24x14xf32>, vector<14x256xf32>, vector<24x256xf32> -> vector<24x256xf32>
    %191 = arith.addf %186, %190 : vector<24x256xf32>
    %c239_i32_141 = arith.constant 239 : i32
    %192 = tpu.dynamic_rotate %155 by %c239_i32_141 dim 1 : vector<14x256xf32>, i32 -> vector<14x256xf32>
    %193 = vector.broadcast %15 : vector<1x256xf32> to vector<14x256xf32>
    %194 = arith.mulf %192, %193 : vector<14x256xf32>
    %cst_142 = arith.constant dense<0.000000e+00> : vector<24x256xf32>
    %195 = tpu.matmul %51, %194, %cst_142 {dimension_numbers = #tpu.dot_dimension_numbers<[1], [0], [0], [1], [0, 0, 1, 1], [], []>} : vector<24x14xf32>, vector<14x256xf32>, vector<24x256xf32> -> vector<24x256xf32>
    %196 = arith.addf %191, %195 : vector<24x256xf32>
    %197 = vector.broadcast %71 : vector<24x1xf32> to vector<24x256xf32>
    %198 = arith.addf %196, %197 : vector<24x256xf32>
    %cst_143 = arith.constant dense<0.000000e+00> : vector<4x256xf32>
    %199 = tpu.matmul %61, %81, %cst_143 {dimension_numbers = #tpu.dot_dimension_numbers<[1], [0], [0], [1], [0, 0, 1, 1], [], []>} : vector<4x4xf32>, vector<4x256xf32>, vector<4x256xf32> -> vector<4x256xf32>
    %c17_i32_144 = arith.constant 17 : i32
    %200 = tpu.dynamic_rotate %81 by %c17_i32_144 dim 1 : vector<4x256xf32>, i32 -> vector<4x256xf32>
    %201 = vector.broadcast %1 : vector<1x256xf32> to vector<4x256xf32>
    %202 = arith.mulf %200, %201 : vector<4x256xf32>
    %cst_145 = arith.constant dense<0.000000e+00> : vector<4x256xf32>
    %203 = tpu.matmul %53, %202, %cst_145 {dimension_numbers = #tpu.dot_dimension_numbers<[1], [0], [0], [1], [0, 0, 1, 1], [], []>} : vector<4x4xf32>, vector<4x256xf32>, vector<4x256xf32> -> vector<4x256xf32>
    %204 = arith.addf %199, %203 : vector<4x256xf32>
    %c16_i32_146 = arith.constant 16 : i32
    %205 = tpu.dynamic_rotate %81 by %c16_i32_146 dim 1 : vector<4x256xf32>, i32 -> vector<4x256xf32>
    %206 = vector.broadcast %3 : vector<1x256xf32> to vector<4x256xf32>
    %207 = arith.mulf %205, %206 : vector<4x256xf32>
    %cst_147 = arith.constant dense<0.000000e+00> : vector<4x256xf32>
    %208 = tpu.matmul %55, %207, %cst_147 {dimension_numbers = #tpu.dot_dimension_numbers<[1], [0], [0], [1], [0, 0, 1, 1], [], []>} : vector<4x4xf32>, vector<4x256xf32>, vector<4x256xf32> -> vector<4x256xf32>
    %209 = arith.addf %204, %208 : vector<4x256xf32>
    %c15_i32_148 = arith.constant 15 : i32
    %210 = tpu.dynamic_rotate %81 by %c15_i32_148 dim 1 : vector<4x256xf32>, i32 -> vector<4x256xf32>
    %211 = vector.broadcast %5 : vector<1x256xf32> to vector<4x256xf32>
    %212 = arith.mulf %210, %211 : vector<4x256xf32>
    %cst_149 = arith.constant dense<0.000000e+00> : vector<4x256xf32>
    %213 = tpu.matmul %57, %212, %cst_149 {dimension_numbers = #tpu.dot_dimension_numbers<[1], [0], [0], [1], [0, 0, 1, 1], [], []>} : vector<4x4xf32>, vector<4x256xf32>, vector<4x256xf32> -> vector<4x256xf32>
    %214 = arith.addf %209, %213 : vector<4x256xf32>
    %c1_i32_150 = arith.constant 1 : i32
    %215 = tpu.dynamic_rotate %81 by %c1_i32_150 dim 1 : vector<4x256xf32>, i32 -> vector<4x256xf32>
    %216 = vector.broadcast %7 : vector<1x256xf32> to vector<4x256xf32>
    %217 = arith.mulf %215, %216 : vector<4x256xf32>
    %cst_151 = arith.constant dense<0.000000e+00> : vector<4x256xf32>
    %218 = tpu.matmul %59, %217, %cst_151 {dimension_numbers = #tpu.dot_dimension_numbers<[1], [0], [0], [1], [0, 0, 1, 1], [], []>} : vector<4x4xf32>, vector<4x256xf32>, vector<4x256xf32> -> vector<4x256xf32>
    %219 = arith.addf %214, %218 : vector<4x256xf32>
    %c255_i32_152 = arith.constant 255 : i32
    %220 = tpu.dynamic_rotate %81 by %c255_i32_152 dim 1 : vector<4x256xf32>, i32 -> vector<4x256xf32>
    %221 = vector.broadcast %9 : vector<1x256xf32> to vector<4x256xf32>
    %222 = arith.mulf %220, %221 : vector<4x256xf32>
    %cst_153 = arith.constant dense<0.000000e+00> : vector<4x256xf32>
    %223 = tpu.matmul %63, %222, %cst_153 {dimension_numbers = #tpu.dot_dimension_numbers<[1], [0], [0], [1], [0, 0, 1, 1], [], []>} : vector<4x4xf32>, vector<4x256xf32>, vector<4x256xf32> -> vector<4x256xf32>
    %224 = arith.addf %219, %223 : vector<4x256xf32>
    %c241_i32_154 = arith.constant 241 : i32
    %225 = tpu.dynamic_rotate %81 by %c241_i32_154 dim 1 : vector<4x256xf32>, i32 -> vector<4x256xf32>
    %226 = vector.broadcast %11 : vector<1x256xf32> to vector<4x256xf32>
    %227 = arith.mulf %225, %226 : vector<4x256xf32>
    %cst_155 = arith.constant dense<0.000000e+00> : vector<4x256xf32>
    %228 = tpu.matmul %65, %227, %cst_155 {dimension_numbers = #tpu.dot_dimension_numbers<[1], [0], [0], [1], [0, 0, 1, 1], [], []>} : vector<4x4xf32>, vector<4x256xf32>, vector<4x256xf32> -> vector<4x256xf32>
    %229 = arith.addf %224, %228 : vector<4x256xf32>
    %c240_i32_156 = arith.constant 240 : i32
    %230 = tpu.dynamic_rotate %81 by %c240_i32_156 dim 1 : vector<4x256xf32>, i32 -> vector<4x256xf32>
    %231 = vector.broadcast %13 : vector<1x256xf32> to vector<4x256xf32>
    %232 = arith.mulf %230, %231 : vector<4x256xf32>
    %cst_157 = arith.constant dense<0.000000e+00> : vector<4x256xf32>
    %233 = tpu.matmul %67, %232, %cst_157 {dimension_numbers = #tpu.dot_dimension_numbers<[1], [0], [0], [1], [0, 0, 1, 1], [], []>} : vector<4x4xf32>, vector<4x256xf32>, vector<4x256xf32> -> vector<4x256xf32>
    %234 = arith.addf %229, %233 : vector<4x256xf32>
    %c239_i32_158 = arith.constant 239 : i32
    %235 = tpu.dynamic_rotate %81 by %c239_i32_158 dim 1 : vector<4x256xf32>, i32 -> vector<4x256xf32>
    %236 = vector.broadcast %15 : vector<1x256xf32> to vector<4x256xf32>
    %237 = arith.mulf %235, %236 : vector<4x256xf32>
    %cst_159 = arith.constant dense<0.000000e+00> : vector<4x256xf32>
    %238 = tpu.matmul %69, %237, %cst_159 {dimension_numbers = #tpu.dot_dimension_numbers<[1], [0], [0], [1], [0, 0, 1, 1], [], []>} : vector<4x4xf32>, vector<4x256xf32>, vector<4x256xf32> -> vector<4x256xf32>
    %239 = arith.addf %234, %238 : vector<4x256xf32>
    %240 = vector.extract_strided_slice %198 {offsets = [0, 0], sizes = [4, 256], strides = [1, 1]} : vector<24x256xf32> to vector<4x256xf32>
    %241 = vector.extract_strided_slice %198 {offsets = [8, 0], sizes = [4, 256], strides = [1, 1]} : vector<24x256xf32> to vector<4x256xf32>
    %242 = vector.extract_strided_slice %198 {offsets = [16, 0], sizes = [4, 256], strides = [1, 1]} : vector<24x256xf32> to vector<4x256xf32>
    %243 = arith.addf %242, %239 : vector<4x256xf32>
    %cst_160 = arith.constant 0.000000e+00 : f32
    %244 = vector.broadcast %cst_160 : f32 to vector<1x256xf32>
    %245 = arith.cmpf ogt, %87, %244 : vector<1x256xf32>
    %cst_161 = arith.constant 1.000000e+00 : f32
    %246 = vector.broadcast %cst_161 : f32 to vector<1x256xf32>
    %247 = arith.select %245, %246, %87 : vector<1x256xi1>, vector<1x256xf32>
    %248 = arith.negf %243 : vector<4x256xf32>
    %249 = math.exp %248 : vector<4x256xf32>
    %cst_162 = arith.constant 1.000000e+00 : f32
    %250 = vector.broadcast %cst_162 : f32 to vector<4x256xf32>
    %251 = arith.addf %250, %249 : vector<4x256xf32>
    %252 = arith.divf %250, %251 : vector<4x256xf32>
    %cst_163 = arith.constant 1.000000e+00 : f32
    %253 = vector.broadcast %cst_163 : f32 to vector<1x256xf32>
    %254 = arith.subf %253, %247 : vector<1x256xf32>
    %255 = vector.broadcast %254 : vector<1x256xf32> to vector<4x256xf32>
    %256 = arith.mulf %252, %255 : vector<4x256xf32>
    %257 = vector.broadcast %247 : vector<1x256xf32> to vector<4x256xf32>
    %258 = arith.addf %256, %257 : vector<4x256xf32>
    %259 = arith.mulf %258, %240 : vector<4x256xf32>
    %260 = arith.mulf %109, %259 : vector<4x256xf32>
    %261 = arith.mulf %241, %258 : vector<4x256xf32>
    %262 = arith.addf %260, %261 : vector<4x256xf32>
    %263 = arith.index_cast %c0_i32 : i32 to index
    %c0_164 = arith.constant 0 : index
    %c0_165 = arith.constant 0 : index
    %264 = vector.load %arg11[%263, %c0_164, %c0_165] : memref<1x4x256xf32, #tpu.memory_space<vmem>>, vector<1x4x256xf32>
    %265 = vector.shape_cast %264 : vector<1x4x256xf32> to vector<4x256xf32>
    %266 = vector.shape_cast %262 : vector<4x256xf32> to vector<1x4x256xf32>
    tpu.vector_store %arg11[%263, %c0_164, %c0_165], %266 {strides = array<i32>} : memref<1x4x256xf32, #tpu.memory_space<vmem>>, vector<1x4x256xf32>,
    %c1_i32_166 = arith.constant 1 : i32
    return
  }
  func.func @transform_0(%arg0: i32) -> (i32, i32, i32) {
    %c0_i32 = arith.constant 0 : i32
    %c0_i32_0 = arith.constant 0 : i32
    %c0_i32_1 = arith.constant 0 : i32
    %c0_i32_2 = arith.constant 0 : i32
    return %c0_i32, %c0_i32_0, %c0_i32_1 : i32, i32, i32
  }
  func.func @transform_1(%arg0: i32) -> (i32, i32, i32) {
    %c0_i32 = arith.constant 0 : i32
    %c0_i32_0 = arith.constant 0 : i32
    %c0_i32_1 = arith.constant 0 : i32
    return %arg0, %c0_i32, %c0_i32_0 : i32, i32, i32
  }
  func.func @transform_2(%arg0: i32) -> (i32, i32, i32) {
    %c0_i32 = arith.constant 0 : i32
    %c0_i32_0 = arith.constant 0 : i32
    %c0_i32_1 = arith.constant 0 : i32
    return %arg0, %c0_i32, %c0_i32_0 : i32, i32, i32
  }
  func.func @transform_3(%arg0: i32) -> (i32, i32, i32) {
    %c0_i32 = arith.constant 0 : i32
    %c0_i32_0 = arith.constant 0 : i32
    %c0_i32_1 = arith.constant 0 : i32
    return %arg0, %c0_i32, %c0_i32_0 : i32, i32, i32
  }
  func.func @transform_4(%arg0: i32) -> (i32, i32, i32) {
    %c0_i32 = arith.constant 0 : i32
    %c0_i32_0 = arith.constant 0 : i32
    %c0_i32_1 = arith.constant 0 : i32
    %c0_i32_2 = arith.constant 0 : i32
    return %c0_i32, %c0_i32_0, %c0_i32_1 : i32, i32, i32
  }
  func.func @transform_5(%arg0: i32) -> (i32, i32, i32) {
    %c0_i32 = arith.constant 0 : i32
    %c0_i32_0 = arith.constant 0 : i32
    %c0_i32_1 = arith.constant 0 : i32
    %c0_i32_2 = arith.constant 0 : i32
    return %c0_i32, %c0_i32_0, %c0_i32_1 : i32, i32, i32
  }
  func.func @transform_6(%arg0: i32) -> (i32, i32) {
    %c0_i32 = arith.constant 0 : i32
    %c0_i32_0 = arith.constant 0 : i32
    %c0_i32_1 = arith.constant 0 : i32
    return %c0_i32, %c0_i32_0 : i32, i32
  }
  func.func @transform_7(%arg0: i32) -> (i32, i32, i32) {
    %c0_i32 = arith.constant 0 : i32
    %c0_i32_0 = arith.constant 0 : i32
    %c0_i32_1 = arith.constant 0 : i32
    %c0_i32_2 = arith.constant 0 : i32
    return %c0_i32, %c0_i32_0, %c0_i32_1 : i32, i32, i32
  }
  func.func @transform_8(%arg0: i32) -> (i32, i32) {
    %c0_i32 = arith.constant 0 : i32
    %c0_i32_0 = arith.constant 0 : i32
    %c0_i32_1 = arith.constant 0 : i32
    return %c0_i32, %c0_i32_0 : i32, i32
  }
  func.func @transform_9(%arg0: i32) -> (i32, i32, i32) {
    %c0_i32 = arith.constant 0 : i32
    %c0_i32_0 = arith.constant 0 : i32
    %c0_i32_1 = arith.constant 0 : i32
    %c0_i32_2 = arith.constant 0 : i32
    return %c0_i32, %c0_i32_0, %c0_i32_1 : i32, i32, i32
  }
  func.func @transform_10(%arg0: i32) -> (i32, i32, i32) {
    %c0_i32 = arith.constant 0 : i32
    %c0_i32_0 = arith.constant 0 : i32
    %c0_i32_1 = arith.constant 0 : i32
    return %arg0, %c0_i32, %c0_i32_0 : i32, i32, i32
  }
}

</mosaic_0001>

<bundles_post_ra>
// kernel: tpu_custom_call.1
= control target key start
LH: loop header
LB: loop body
LE: loop exit
PB: predicated region body
PF: predicated region fallthrough
CT: control target
= control target key end

     0   :  { %15 = vsyncpa [#allocation3], 0  ;;  %s5109_s0 = inlined_call_operand.vmem [shape: f32[9,1,256], index: 0, kind: input, shape index: {}]   ;;  %s5110_s1 = inlined_call_operand.vmem [shape: f32[2,4,256], index: 1, kind: input, shape index: {}]   ;;  %s5111_s2 = inlined_call_operand.vmem [shape: f32[2,1,256], index: 2, kind: input, shape index: {}]   ;;  %s5112_s3 = inlined_call_operand.vmem [shape: f32[2,3,256], index: 3, kind: input, shape index: {}]   ;;  %s5113_s4 = inlined_call_operand.vmem [shape: f32[2,4,256], index: 4, kind: input, shape index: {}]   ;;  %s5114_s5 = inlined_call_operand.vmem [shape: f32[9,14,3], index: 5, kind: input, shape index: {}]   ;;  %s5115_s6 = inlined_call_operand.vmem [shape: f32[14,1], index: 6, kind: input, shape index: {}]   ;;  %s5116_s7 = inlined_call_operand.vmem [shape: f32[9,24,14], index: 7, kind: input, shape index: {}]   ;;  %s5117_s8 = inlined_call_operand.vmem [shape: f32[24,1], index: 8, kind: input, shape index: {}]   ;;  %s5118_s9 = inlined_call_operand.vmem [shape: f32[9,4,4], index: 9, kind: input, shape index: {}]   ;;  %s5119_s10 = inlined_call_operand.hbm [shape: f32[2,4,256], index: 10, kind: output, shape index: {}]  }
   0x1   :  { %17 = vsyncpa [#allocation3 + $0x1], 0  ;;  %s4138_s13 = smov 0   ;;  %s4140_s14 = smov 0  }
   0x2   :  { %s4142_s15 = smov 0   ;;  %s4144_s16 = smov 0  }
   0x3 LB: > { %s4159_s17 = sadd.s32 4294967295, %s4069_s16   ;;  %s3599_s18 = sadd.s32 4294967294, %s4069_s16   ;;  %s4069_s16 = sphi %s4144_s16, %s5141_s16   ;;  %s4065_s15 = sphi %s4142_s15, %s5140_s15   ;;  %s4061_s14 = sphi %s4140_s14, %s5139_s14   ;;  %s4057_s13 = sphi %s4138_s13, %s5138_s13  }
   0x4   : > { %s4163_s19 = sadd.s32 1, %s4069_s16   ;;  %s255_s20 = sadd.s32 1, %s4065_s15 }
   0x5   : > { %s252_s21 = ssub.s32 %s4069_s16, %s4163_s19  ;;  %p265_p0 = scmp.ne.s32.totalorder %s4065_s15, %s4061_s14 }
   0x6   : > { %p253_p1 = scmp.eq.s32.totalorder %s252_s21, 0  ;;  %p266_p2 = scmp.eq.s32.totalorder %s4159_s17, 1 }
   0x7   : > { %p271_p3 = scmp.ne.s32.totalorder %s4061_s14, %s4057_s13  ;;  %p272_p4 = scmp.eq.s32.totalorder %s3599_s18, 1 }
   0x8   : > { %s4174_s22 = scalar_select %p253_p1, %s4065_s15, %s255_s20  }
   0x9   : > { %p4176_p5 = por %p266_p2, %p265_p0  ;;  %p4180_p6 = por %p272_p4, %p271_p3 }
   0xa   : > { %p3602_p7 = scmp.ge.s32.totalorder %s4069_s16, 1  ;;  %p334_p8 = scmp.lt.s32.totalorder %s4069_s16, 3 }
   0xc   : > { %p335_p9 = pnand %p3602_p7, %p334_p8 }
   0xd   : > { %p381_p10 = scmp.lt.s32.totalorder (!%p335_p9), %s4159_s17, 1  ;;  %v4071_v0 = vmov (!%p335_p9), 0.0   ;;  %s5122_s30 = smov (!%p335_p9), 17   ;;  %v488_v3 = vld [vmem:[%s5115_s6] sm:$0xff] (!%p335_p9)  ;;  %v489_v4 = vld [vmem:[%s5115_s6 + $0x8] sm:$0x3f] (!%p335_p9)  ;;  %v496_v6 = vlaneseq (!%p335_p9) }
   0xe   : > { %338 = sbr.rel (%p335_p9) target bundleno = 968 (0x3c8), region = 60  ;;  %658 = vmatprep.mubr.f32.mxu0 (!%p335_p9), %v4071_v0  ;;  %2000 = vmatprep.mubr.f32.mxu1 (!%p335_p9), %v4071_v0  ;;  %s5120_s11 = smov (!%p335_p9), 16   ;;  %v4080_v5 = vmov (!%p335_p9), 0   ;;  %v395_v11 = vld [vmem:[%s5109_s0] sm:$0x3] (!%p335_p9)  ;;  %vm587_vm2 = vcmask (!%p335_p9), 1042432  }
   0xf   : > { %s4074_s12 = smov (!%p335_p9), 15   ;;  %s4075_s18 = smov (!%p335_p9), 1   ;;  %3993 = vset.pattern.permute.xlu0 (!%p335_p9), %v4080_v5  ;;  %3994 = vset.pattern.permute.xlu1 (!%p335_p9), %v4080_v5  ;;  %v4232_v7 = vshrl.u32 (!%p335_p9), %v496_v6, 7  ;;  %v4234_v8 = vand.u32 (!%p335_p9), 127, %v496_v6  ;;  %v3609_v14 = vld [vmem:[%s5109_s0 + $0x2] sm:$0x3] (!%p335_p9) }
  0x10   : > { %s4076_s20 = smov (!%p335_p9), 127   ;;  %s4077_s21 = smov (!%p335_p9), 113   ;;  %v410_v25 = vld [vmem:[%s5114_s5] sm:$0xff] (!%p335_p9)  ;;  %vm580_vm3 = vcmask (!%p335_p9), 23552   ;;  %v411_v31 = vld [vmem:[%s5114_s5 + $0x8] sm:$0x3f] (!%p335_p9) }
  0x11   : > { %s5127_s27 = smov (!%p335_p9), 112   ;;  %s5125_s28 = smov (!%p335_p9), 111   ;;  %v4237_v9 = vsub.s32 (!%p335_p9), 0, %v4232_v7  ;;  %v4240_v10 = vsub.s32 (!%p335_p9), 1, %v4232_v7  ;;  %vm564_vm0 = vcmp.lt.s32.totalorder (!%p335_p9), %v4234_v8, 17  ;;  %vm762_vm1 = vcmp.lt.s32.totalorder (!%p335_p9), %v4234_v8, 16 }
  0x12   : > { %v3610_v27 = vld [vmem:[%s5109_s0 + $0x4] sm:$0x3] (!%p335_p9)  ;;  %vm875_vm4 = vcmp.lt.s32.totalorder (!%p335_p9), %v4234_v8, 15  ;;  %v3611_v38 = vld [vmem:[%s5109_s0 + $0x6] sm:$0x3] (!%p335_p9)  ;;  %vm988_vm5 = vcmp.lt.s32.totalorder (!%p335_p9), %v4234_v8, 1 }
  0x13   : > { %v4250_v15 = vrot.slane (!%p335_p9), %v395_v11, %v4237_v9  ;;  %v4253_v16 = vrot.slane (!%p335_p9), %v395_v11, %v4240_v10  ;;  %v4257_v18 = vrot.slane (!%p335_p9), %v3609_v14, %v4240_v10  ;;  %v4280_v30 = vrot.slane (!%p335_p9), %v3609_v14, %v4237_v9  ;;  %v3622_v36 = vld [vmem:[%s5114_s5 + $0x40] sm:$0xff] (!%p335_p9)  ;;  %v3623_v41 = vld [vmem:[%s5114_s5 + $0x48] sm:$0x3f] (!%p335_p9)  ;;  %v3616_v47 = vld [vmem:[%s5114_s5 + $0x10] sm:$0xff] (!%p335_p9) }
  0x14   : > { %v4292_v33 = vrot.slane (!%p335_p9), %v3610_v27, %v4240_v10  ;;  %v4314_v42 = vrot.slane (!%p335_p9), %v3610_v27, %v4237_v9  ;;  %v4320_v44 = vrot.slane (!%p335_p9), %v3611_v38, %v4240_v10  ;;  %v3612_v49 = vld [vmem:[%s5109_s0 + $0xa] sm:$0x3] (!%p335_p9)  ;;  %vm1101_vm6 = vcmp.lt.s32.totalorder (!%p335_p9), %v4234_v8, 127  ;;  %v3617_v52 = vld [vmem:[%s5114_s5 + $0x18] sm:$0x3f] (!%p335_p9)  ;;  %v3618_v58 = vld [vmem:[%s5114_s5 + $0x20] sm:$0xff] (!%p335_p9) }
  0x15   : > { %s4188_s25 = scalar_select %p381_p10, %s4159_s17, 1  ;;  %v4342_v53 = vrot.slane %v3611_v38, %v4237_v9  ;;  %v4348_v55 = vrot.slane %v3612_v49, %v4240_v10  ;;  %v3613_v60 = vld [vmem:[%s5109_s0 + $0xc] sm:$0x3]  ;;  %vm1214_vm7 = vcmp.lt.s32.totalorder %v4234_v8, 113  ;;  %v3620_v6 = vld [vmem:[%s5114_s5 + $0x30] sm:$0xff]  ;;  %vm1327_vm8 = vcmp.lt.s32.totalorder %v4234_v8, 112 }
  0x16   : > { %v3619_v63 = vld [vmem:[%s5114_s5 + $0x28] sm:$0x3f]  ;;  %vm1440_vm9 = vcmp.lt.s32.totalorder %v4234_v8, 111  ;;  %vm499_vm10 = vcmp.lt.s32.totalorder %v4232_v7, 4  ;;  %vm507_vm11 = vcmask 1043456   ;;  %vm1597_vm12 = vcmask 1045504  }
  0x17   : > { %s5124_s26 = sshll.u32 %s4188_s25, 3  ;;  %vm4081_vm13 = vmmov 1   ;;  %vm1587_vm15 = vcmask 113664   ;;  %v3663_v8 = vld [vmem:[%s5118_s9 + $0x20] sm:$0xf] }
  0x18   : > { %s394_s29 = scalar_lea.vmem %s5112_s3, %s5124_s26  ;;  %s5134_s26 = smov 17   ;;  %vm4615_vm14 = vmpackc.low %vm1597_vm12, %vm4081_vm13 }
  0x19   : > { %v4198_v1 = vld [vmem:[%s394_s29] sm:$0x77]  ;;  %s5133_s29 = smov 111  }
  0x1a   : > { %558 = vrot.lane.b32.xlu0 %v4198_v1, %s5122_s30  ;;  %v556_v2 = vcombine.high %v4198_v1, %v4198_v1  ;;  %758 = vrot.lane.b32.xlu1 %v4198_v1, %s5120_s11 }
  0x1e   : > { %560 = vrot.lane.b32.xlu0 %v556_v2, %s5122_s30  ;;  %760 = vrot.lane.b32.xlu1 %v556_v2, %s5120_s11  ;;  %s3606_s30 = sshll.u32 %s4188_s25, 1 }
  0x22   : > { %873 = vrot.lane.b32.xlu1 %v556_v2, %s4074_s12  ;;  %871 = vrot.lane.b32.xlu0 %v4198_v1, %s4074_s12 }
  0x26   : > { %986 = vrot.lane.b32.xlu1 %v556_v2, %s4075_s18  ;;  %984 = vrot.lane.b32.xlu0 %v4198_v1, %s4075_s18 }
  0x2a   : > { %1099 = vrot.lane.b32.xlu1 %v556_v2, %s4076_s20  ;;  %1097 = vrot.lane.b32.xlu0 %v4198_v1, %s4076_s20 }
  0x2e   : > { %1212 = vrot.lane.b32.xlu1 %v556_v2, %s4077_s21  ;;  %1210 = vrot.lane.b32.xlu0 %v4198_v1, %s4077_s21 }
  0x32   : > { %1325 = vrot.lane.b32.xlu1 %v556_v2, %s5127_s27  ;;  %1323 = vrot.lane.b32.xlu0 %v4198_v1, %s5127_s27  ;;  %s5131_s27 = smov 112  }
  0x36   : > { %1438 = vrot.lane.b32.xlu1 %v556_v2, %s5125_s28  ;;  %1436 = vrot.lane.b32.xlu0 %v4198_v1, %s5125_s28  ;;  %s5132_s28 = sshll.u32 %s4188_s25, 3  ;;  %s378_s25 = sand.u32 1, %s4061_s14  }
  0x37   : > { %s385_s11 = scalar_lea.vmem %s5110_s1, %s5132_s28  ;;  %s5135_s28 = smov 16  }
  0x38   : > { %v4537_v7 = vld [vmem:[%s385_s11] sm:$0xff] }
  0x3a   : > { %1551 = vperm.xlu0 %3993, %v488_v3   ;;  %1556 = vperm.xlu1 %3994, %v489_v4   ;;  %v4376_v3 = vrot.slane %v3613_v60, %v4240_v10 }
  0x8c   : > { %v559_v12 = vpop.permute.xlu0 %558  ;;  %v759_v13 = vpop.permute.xlu1 %758 }
  0x90   : > { %v561_v17 = vpop.permute.xlu0 %560  ;;  %v761_v19 = vpop.permute.xlu1 %760 }
  0x91   : > { %v565_v20 = vsel %vm564_vm0, %v559_v12, %v561_v17  ;;  %v566_v21 = vsel %vm564_vm0, %v561_v17, %v559_v12  ;;  %v763_v22 = vsel %vm762_vm1, %v759_v13, %v761_v19  ;;  %v764_v32 = vsel %vm762_vm1, %v761_v19, %v759_v13  ;;  %v3614_v12 = vld [vmem:[%s5109_s0 + $0xe] sm:$0x3]  ;;  %v3621_v17 = vld [vmem:[%s5114_s5 + $0x38] sm:$0x3f] }
  0x92   : > { %v578_v23 = vmul.f32 %v4250_v15, %v566_v21  ;;  %v579_v24 = vmul.f32 %v4253_v16, %v565_v20  ;;  %v777_v26 = vmul.f32 %v4257_v18, %v763_v22  ;;  %v776_v35 = vmul.f32 %v4280_v30, %v764_v32 }
  0x93   : > { %v4398_v19 = vrot.slane %v3613_v60, %v4237_v9  ;;  %v4404_v21 = vrot.slane %v3614_v12, %v4240_v10 }
  0x94   : > { %3665 = vmatprep.subr.msk.mxu0 %vm587_vm2, %v579_v24  ;;  %v874_v28 = vpop.permute.xlu1 %873  ;;  %v872_v29 = vpop.permute.xlu0 %871  ;;  %v3624_v24 = vld [vmem:[%s5114_s5 + $0x50] sm:$0xff] }
  0x95   : > { %3666 = vmatpush1.msk.msra.mxu0 %vm587_vm2, %v578_v23  ;;  %v876_v34 = vsel %vm875_vm4, %v872_v29, %v874_v28  ;;  %v877_v43 = vsel %vm875_vm4, %v874_v28, %v872_v29  ;;  %v3625_v29 = vld [vmem:[%s5114_s5 + $0x58] sm:$0x3f] }
  0x96   : > { %3667 = vmatmul.mubr.msk.f32.vlgmr.msra.gmra.mrb[0].mxu0 %vm580_vm3, %v410_v25  ;;  %3669 = vmatprep.subr.msk.mxu0 %vm587_vm2, %v556_v2  ;;  %v890_v37 = vmul.f32 %v4292_v33, %v876_v34  ;;  %v889_v46 = vmul.f32 %v4314_v42, %v877_v43 }
  0x97   : > { %664 = vmatprep.mubr.f32.mxu0 %v4071_v0  ;;  %3670 = vmatpush1.msk.msra.mxu0 %vm587_vm2, %v4198_v1  ;;  %v4370_v1 = vrot.slane %v3612_v49, %v4237_v9 }
  0x98   : > { %3673 = vmatprep.subr.msk.mxu0 %vm587_vm2, %v777_v26  ;;  %v987_v39 = vpop.permute.xlu1 %986  ;;  %v985_v40 = vpop.permute.xlu0 %984  ;;  %v3615_v26 = vld [vmem:[%s5109_s0 + $0x10] sm:$0x3] }
  0x99   : > { %v989_v45 = vsel %vm988_vm5, %v985_v40, %v987_v39  ;;  %v990_v54 = vsel %vm988_vm5, %v987_v39, %v985_v40  ;;  %v4432_v34 = vrot.slane %v3615_v26, %v4240_v10  ;;  %v3627_v39 = vld [vmem:[%s5114_s5 + $0x68] sm:$0x3f]  ;;  %v4450_v40 = vrot.slane %v3615_v26, %v4237_v9 }
  0x9a   : > { %3668 = vmatmul.mubr.msk.f32.gmra.mrb[2].mxu0 %vm580_vm3, %v411_v31  ;;  %v1003_v48 = vmul.f32 %v4320_v44, %v989_v45  ;;  %v1002_v57 = vmul.f32 %v4342_v53, %v990_v54  ;;  %v4426_v31 = vrot.slane %v3614_v12, %v4237_v9  ;;  %v3628_v45 = vld [vmem:[%s5114_s5 + $0x70] sm:$0xff] }
  0x9b   : > { %745 = vmatprep.mubr.f32.mxu0 %v4071_v0 }
  0x9c   : > { %v1100_v50 = vpop.permute.xlu1 %1099  ;;  %v1098_v51 = vpop.permute.xlu0 %1097 }
  0x9d   : > { %v1103_v56 = vsel %vm1101_vm6, %v1100_v50, %v1098_v51  ;;  %v1102_v2 = vsel %vm1101_vm6, %v1098_v51, %v1100_v50 }
  0x9e   : > { %3671 = vmatmul.mubr.msk.f32.vlgmr.msra.gmra.mrb[0].mxu0 %vm580_vm3, %v3622_v36  ;;  %v1116_v59 = vmul.f32 %v4348_v55, %v1103_v56  ;;  %v1115_v5 = vmul.f32 %v4370_v1, %v1102_v2 }
  0x9f   : > { %3674 = vmatpush1.msk.msra.mxu0 %vm587_vm2, %v776_v35  ;;  %751 = vmatprep.mubr.f32.mxu0 %v4071_v0 }
  0xa0   : > { %3677 = vmatprep.subr.msk.mxu0 %vm587_vm2, %v890_v37  ;;  %v1213_v61 = vpop.permute.xlu1 %1212  ;;  %v1211_v62 = vpop.permute.xlu0 %1210  ;;  %v3626_v37 = vld [vmem:[%s5114_s5 + $0x60] sm:$0xff] }
  0xa1   : > { %v1216_v4 = vsel %vm1214_vm7, %v1213_v61, %v1211_v62  ;;  %v1215_v20 = vsel %vm1214_vm7, %v1211_v62, %v1213_v61 }
  0xa2   : > { %3672 = vmatmul.mubr.msk.f32.gmra.mrb[2].mxu0 %vm580_vm3, %v3623_v41  ;;  %v1229_v11 = vmul.f32 %v4376_v3, %v1216_v4  ;;  %v1228_v23 = vmul.f32 %v4398_v19, %v1215_v20  ;;  %v4545_v4 = vcombine.high %v4537_v7, %v4537_v7 }
  0xa3   : > { %854 = vmatprep.mubr.f32.mxu0 %v4071_v0 }
  0xa4   : > { %v1326_v13 = vpop.permute.xlu1 %1325  ;;  %v1324_v14 = vpop.permute.xlu0 %1323 }
  0xa5   : > { %v1329_v22 = vsel %vm1327_vm8, %v1326_v13, %v1324_v14  ;;  %v1328_v32 = vsel %vm1327_vm8, %v1324_v14, %v1326_v13 }
  0xa6   : > { %3675 = vmatmul.mubr.msk.f32.vlgmr.msra.gmra.mrb[0].mxu0 %vm580_vm3, %v3616_v47  ;;  %v1342_v25 = vmul.f32 %v4404_v21, %v1329_v22  ;;  %v1341_v36 = vmul.f32 %v4426_v31, %v1328_v32  ;;  %v3630_v47 = vld [vmem:[%s5114_s5 + $0x80] sm:$0xff] }
  0xa7   : > { %860 = vmatprep.mubr.f32.mxu0 %v4071_v0  ;;  %3678 = vmatpush1.msk.msra.mxu0 %vm587_vm2, %v889_v46  ;;  %v3629_v46 = vld [vmem:[%s5114_s5 + $0x78] sm:$0x3f] }
  0xa8   : > { %3681 = vmatprep.subr.msk.mxu0 %vm587_vm2, %v1003_v48  ;;  %v1439_v27 = vpop.permute.xlu1 %1438  ;;  %v1437_v28 = vpop.permute.xlu0 %1436  ;;  %v3631_v48 = vld [vmem:[%s5114_s5 + $0x88] sm:$0x3f] }
  0xa9   : > { %v1442_v35 = vsel %vm1440_vm9, %v1439_v27, %v1437_v28  ;;  %v1441_v41 = vsel %vm1440_vm9, %v1437_v28, %v1439_v27 }
  0xaa   : > { %3676 = vmatmul.mubr.msk.f32.gmra.mrb[2].mxu0 %vm580_vm3, %v3617_v52  ;;  %v1455_v38 = vmul.f32 %v4432_v34, %v1442_v35  ;;  %v1454_v43 = vmul.f32 %v4450_v40, %v1441_v41  ;;  %v508_v35 = vsel %vm507_vm11, %v4537_v7, 0.0 }
  0xab   : > { %967 = vmatprep.mubr.f32.mxu0 %v4071_v0 }
  0xae   : > { %3679 = vmatmul.mubr.msk.f32.vlgmr.msra.gmra.mrb[0].mxu0 %vm580_vm3, %v3618_v58 }
  0xaf   : > { %973 = vmatprep.mubr.f32.mxu0 %v4071_v0  ;;  %3682 = vmatpush1.msk.msra.mxu0 %vm587_vm2, %v1002_v57 }
  0xb0   : > { %3685 = vmatprep.subr.msk.mxu0 %vm587_vm2, %v1116_v59 }
  0xb2   : > { %3680 = vmatmul.mubr.msk.f32.gmra.mrb[2].mxu0 %vm580_vm3, %v3619_v63 }
  0xb3   : > { %1080 = vmatprep.mubr.f32.mxu0 %v4071_v0 }
  0xb6   : > { %3683 = vmatmul.mubr.msk.f32.vlgmr.msra.gmra.mrb[0].mxu0 %vm580_vm3, %v3620_v6 }
  0xb7   : > { %1086 = vmatprep.mubr.f32.mxu0 %v4071_v0  ;;  %3686 = vmatpush1.msk.msra.mxu0 %vm587_vm2, %v1115_v5  ;;  %v520_v5 = vmul.f32 %v4537_v7, %v4537_v7 }
  0xb8   : > { %3689 = vmatprep.subr.msk.mxu0 %vm587_vm2, %v1229_v11 }
  0xb9   : > { %v1552_v49 = vpop.permute.xlu0 %1551  ;;  %v1557_v56 = vpop.permute.xlu1 %1556  ;;  %v522_v6 = vcombine.high %v520_v5, %v520_v5  ;;  %v524_v13 = vsel %vm507_vm11, %v520_v5, 0.0 }
  0xba   : > { %3684 = vmatmul.mubr.msk.f32.gmra.mrb[2].mxu0 %vm580_vm3, %v3621_v17 }
  0xbb   : > { %1193 = vmatprep.mubr.f32.mxu0 %v4071_v0  ;;  %v525_v14 = vsel %vm507_vm11, %v522_v6, 0.0 }
  0xbc   : > { %v526_v20 = vadd.f32 %v525_v14, %v524_v13  ;;  %v3637_v13 = vld [vmem:[%s5116_s7 + $0x40] sm:$0xff] }
  0xbe   : > { %3687 = vmatmul.mubr.msk.f32.vlgmr.msra.gmra.mrb[0].mxu0 %vm580_vm3, %v3624_v24 }
  0xbf   : > { %1199 = vmatprep.mubr.f32.mxu0 %v4071_v0  ;;  %3690 = vmatpush1.msk.msra.mxu0 %vm587_vm2, %v1228_v23 }
  0xc0   : > { %3693 = vmatprep.subr.msk.mxu0 %vm587_vm2, %v1342_v25 }
  0xc2   : > { %3688 = vmatmul.mubr.msk.f32.gmra.mrb[2].mxu0 %vm580_vm3, %v3625_v29 }
  0xc3   : > { %1306 = vmatprep.mubr.f32.mxu0 %v4071_v0 }
  0xc6   : > { %3691 = vmatmul.mubr.msk.f32.vlgmr.msra.gmra.mrb[0].mxu0 %vm580_vm3, %v3626_v37 }
  0xc7   : > { %1312 = vmatprep.mubr.f32.mxu0 %v4071_v0  ;;  %3694 = vmatpush1.msk.msra.mxu0 %vm587_vm2, %v1341_v36  ;;  %v509_v36 = vsel %vm507_vm11, %v4545_v4, 0.0 }
  0xc8   : > { %3697 = vmatprep.subr.msk.mxu0 %vm587_vm2, %v1455_v38 }
  0xca   : > { %3692 = vmatmul.mubr.msk.f32.gmra.mrb[2].mxu0 %vm580_vm3, %v3627_v39 }
  0xcb   : > { %1419 = vmatprep.mubr.f32.mxu0 %v4071_v0 }
  0xce   : > { %3695 = vmatmul.mubr.msk.f32.vlgmr.msra.gmra.mrb[0].mxu0 %vm580_vm3, %v3628_v45  ;;  %v510_v45 = vadd.f32 %v509_v36, %v508_v35 }
  0xcf   : > { %1425 = vmatprep.mubr.f32.mxu0 %v4071_v0  ;;  %3698 = vmatpush1.msk.msra.mxu0 %vm587_vm2, %v1454_v43 }
  0xd2   : > { %3696 = vmatmul.mubr.msk.f32.gmra.mrb[2].mxu0 %vm580_vm3, %v3629_v46 }
  0xd3   : > { %1532 = vmatprep.mubr.f32.mxu0 %v4071_v0 }
  0xd6   : > { %3699 = vmatmul.mubr.msk.f32.vlgmr.msra.gmra.mrb[0].mxu0 %vm580_vm3, %v3630_v47  ;;  %v3635_v47 = vld [vmem:[%s5116_s7 + $0x30] sm:$0xff] }
  0xd7   : > { %1538 = vmatprep.mubr.f32.mxu0 %v4071_v0 }
  0xda   : > { %3700 = vmatmul.mubr.msk.f32.gmra.mrb[2].mxu0 %vm580_vm3, %v3631_v48 }
  0xdb   : > { %1668 = vmatprep.mubr.f32.mxu0 %v4071_v0 }
 0x1a9   : > { %v1534_v50 = vpop.f32.mrb[0].mxu0 }
 0x1aa   : > { %v1559_v51 = vadd.f32 %v1552_v49, %v1534_v50  ;;  %v1536_v52 = vpop.f32.mrb[1].mxu0 }
 0x1ab   : > { %v1560_v54 = vadd.f32 %v1552_v49, %v1536_v52 }
 0x1ac   : > { %v1563_v57 = vmax.f32 %v1559_v51, 0.0 }
 0x1ad   : > { %v1540_v58 = vpop.f32.mrb[2].mxu0  ;;  %v1564_v60 = vmax.f32 %v1560_v54, 0.0 }
 0x1ae   : > { %v4480_v59 = vsel %vm499_vm10, %v1563_v57, %v1559_v51  ;;  %v4482_v61 = vadd.f32 %v1557_v56, %v1540_v58  ;;  %v1542_v62 = vpop.f32.mrb[3].mxu0 }
 0x1af   : > { %1905 = vrot.lane.b32.xlu1 %v4480_v59, %s4074_s12  ;;  %v4488_v63 = vsel %vm499_vm10, %v1564_v60, %v1560_v54  ;;  %v4490_v2 = vadd.f32 %v1557_v56, %v1542_v62  ;;  %v3636_v62 = vld [vmem:[%s5116_s7 + $0x38] sm:$0xff] }
 0x1b0   : > { %1907 = vrot.lane.b32.xlu0 %v4482_v61, %s4074_s12 }
 0x1b3   : > { %1909 = vrot.lane.b32.xlu1 %v4488_v63, %s4074_s12 }
 0x1b4   : > { %1911 = vrot.lane.b32.xlu0 %v4490_v2, %s4074_s12 }
 0x1b7   : > { %2025 = vrot.lane.b32.xlu1 %v4480_v59, %s4075_s18 }
 0x1b8   : > { %2027 = vrot.lane.b32.xlu0 %v4482_v61, %s4075_s18 }
 0x1bb   : > { %2029 = vrot.lane.b32.xlu1 %v4488_v63, %s4075_s18 }
 0x1bc   : > { %2031 = vrot.lane.b32.xlu0 %v4490_v2, %s4075_s18 }
 0x1bf   : > { %2145 = vrot.lane.b32.xlu1 %v4480_v59, %s4076_s20 }
 0x1c0   : > { %2147 = vrot.lane.b32.xlu0 %v4482_v61, %s4076_s20 }
 0x1c3   : > { %2149 = vrot.lane.b32.xlu1 %v4488_v63, %s4076_s20 }
 0x1c4   : > { %2151 = vrot.lane.b32.xlu0 %v4490_v2, %s4076_s20 }
 0x1c7   : > { %2265 = vrot.lane.b32.xlu1 %v4480_v59, %s4077_s21 }
 0x1c8   : > { %2267 = vrot.lane.b32.xlu0 %v4482_v61, %s4077_s21 }
 0x1cb   : > { %2269 = vrot.lane.b32.xlu1 %v4488_v63, %s4077_s21 }
 0x1cc   : > { %2271 = vrot.lane.b32.xlu0 %v4490_v2, %s4077_s21 }
 0x1cf   : > { %2385 = vrot.lane.b32.xlu1 %v4480_v59, %s5131_s27 }
 0x1d0   : > { %2387 = vrot.lane.b32.xlu0 %v4482_v61, %s5131_s27 }
 0x1d3   : > { %2389 = vrot.lane.b32.xlu1 %v4488_v63, %s5131_s27 }
 0x1d4   : > { %2391 = vrot.lane.b32.xlu0 %v4490_v2, %s5131_s27 }
 0x1d7   : > { %2505 = vrot.lane.b32.xlu1 %v4480_v59, %s5133_s29 }
 0x1d8   : > { %2507 = vrot.lane.b32.xlu0 %v4482_v61, %s5133_s29 }
 0x1db   : > { %2509 = vrot.lane.b32.xlu1 %v4488_v63, %s5133_s29 }
 0x1dc   : > { %2511 = vrot.lane.b32.xlu0 %v4490_v2, %s5133_s29 }
 0x1df   : > { %2646 = vrot.lane.b32.xlu1 %v4537_v7, %s5134_s26 }
 0x1e0   : > { %2648 = vrot.lane.b32.xlu0 %v4545_v4, %s5134_s26 }
 0x1e3   : > { %2813 = vrot.lane.b32.xlu1 %v4537_v7, %s5135_s28 }
 0x1e4   : > { %2815 = vrot.lane.b32.xlu0 %v4545_v4, %s5135_s28 }
 0x1e7   : > { %2903 = vrot.lane.b32.xlu1 %v4537_v7, %s4074_s12 }
 0x1e8   : > { %2905 = vrot.lane.b32.xlu0 %v4545_v4, %s4074_s12 }
 0x1eb   : > { %1571 = vrot.lane.b32.xlu1 %v4480_v59, %s5134_s26 }
 0x1ec   : > { %1573 = vrot.lane.b32.xlu0 %v4482_v61, %s5134_s26 }
 0x1ef   : > { %1575 = vrot.lane.b32.xlu1 %v4488_v63, %s5134_s26 }
 0x1f0   : > { %1577 = vrot.lane.b32.xlu0 %v4490_v2, %s5134_s26 }
 0x1f3   : > { %2993 = vrot.lane.b32.xlu1 %v4537_v7, %s4075_s18 }
 0x1f4   : > { %2995 = vrot.lane.b32.xlu0 %v4545_v4, %s4075_s18 }
 0x1f7   : > { %3083 = vrot.lane.b32.xlu1 %v4537_v7, %s4076_s20 }
 0x1f8   : > { %3085 = vrot.lane.b32.xlu0 %v4545_v4, %s4076_s20 }
 0x1fb   : > { %3173 = vrot.lane.b32.xlu1 %v4537_v7, %s4077_s21 }
 0x1fc   : > { %3175 = vrot.lane.b32.xlu0 %v4545_v4, %s4077_s21 }
 0x1ff   : > { %1785 = vrot.lane.b32.xlu1 %v4480_v59, %s5135_s28 }
 0x200   : > { %1787 = vrot.lane.b32.xlu0 %v4482_v61, %s5135_s28 }
 0x203   : > { %1789 = vrot.lane.b32.xlu1 %v4488_v63, %s5135_s28 }
 0x204   : > { %1791 = vrot.lane.b32.xlu0 %v4490_v2, %s5135_s28 }
 0x207   : > { %3263 = vrot.lane.b32.xlu1 %v4537_v7, %s5131_s27 }
 0x208   : > { %3265 = vrot.lane.b32.xlu0 %v4545_v4, %s5131_s27 }
 0x20b   : > { %3353 = vrot.lane.b32.xlu1 %v4537_v7, %s5133_s29 }
 0x20c   : > { %3355 = vrot.lane.b32.xlu0 %v4545_v4, %s5133_s29 }
 0x221   : > { %v1906_v11 = vpop.permute.xlu1 %1905 }
 0x222   : > { %v1908_v12 = vpop.permute.xlu0 %1907 }
 0x225   : > { %v1910_v17 = vpop.permute.xlu1 %1909 }
 0x226   : > { %v1913_v22 = vsel %vm875_vm4, %v1906_v11, %v1910_v17  ;;  %v1915_v23 = vsel %vm875_vm4, %v1910_v17, %v1906_v11  ;;  %v1912_v24 = vpop.permute.xlu0 %1911 }
 0x227   : > { %v1917_v25 = vmul.f32 %v1915_v23, %v4314_v42  ;;  %v1918_v26 = vmul.f32 %v1913_v22, %v4292_v33  ;;  %v1914_v27 = vsel %vm875_vm4, %v1908_v12, %v1912_v24  ;;  %v1916_v28 = vsel %vm875_vm4, %v1912_v24, %v1908_v12 }
 0x228   : > { %v1919_v29 = vmul.f32 %v1916_v28, %v4314_v42  ;;  %v1920_v32 = vmul.f32 %v1914_v27, %v4292_v33 }
 0x229   : > { %v2026_v37 = vpop.permute.xlu1 %2025 }
 0x22a   : > { %v2028_v39 = vpop.permute.xlu0 %2027  ;;  %v3801_v41 = vpack.c.bf16 %v1920_v32, %v1918_v26  ;;  %v3804_v43 = vpack.c.bf16 %v1919_v29, %v1917_v25  ;;  %v3638_v29 = vld [vmem:[%s5116_s7 + $0x48] sm:$0xff] }
 0x22b   : > { %527 = vadd.xlane.f32.xlu0 %v526_v20 }
 0x22c   : > { %3803 = vmatprep.subr.msk.bf16.mxu1 %vm4615_vm14, %v3801_v41  ;;  %v490_v41 = vld [vmem:[%s5117_s8] sm:$0xff] }
 0x22d   : > { %v2030_v46 = vpop.permute.xlu1 %2029  ;;  %3806 = vmatpush1.bf16.msk.msra.mxu1 %vm4615_vm14, %v3804_v43 }
 0x22e   : > { %v2033_v48 = vsel %vm988_vm5, %v2026_v37, %v2030_v46  ;;  %v2035_v49 = vsel %vm988_vm5, %v2030_v46, %v2026_v37  ;;  %v2032_v50 = vpop.permute.xlu0 %2031  ;;  %v492_v46 = vld [vmem:[%s5117_s8 + $0x10] sm:$0xff] }
 0x22f   : > { %v2037_v51 = vmul.f32 %v2035_v49, %v4342_v53  ;;  %v2038_v52 = vmul.f32 %v2033_v48, %v4320_v44  ;;  %v2034_v54 = vsel %vm988_vm5, %v2028_v39, %v2032_v50  ;;  %v2036_v56 = vsel %vm988_vm5, %v2032_v50, %v2028_v39  ;;  %511 = vadd.xlane.f32.xlu1 %v510_v45  ;;  %v3639_v39 = vld [vmem:[%s5116_s7 + $0x50] sm:$0xff] }
 0x230   : > { %v2039_v57 = vmul.f32 %v2036_v56, %v4342_v53  ;;  %v2040_v58 = vmul.f32 %v2034_v54, %v4320_v44  ;;  %3718 = vmatmul.mubr.msk.f32.vlgmr.msra.gmra.mrb[0].mxu1 %vm1587_vm15, %v3635_v47  ;;  %v3640_v54 = vld [vmem:[%s5116_s7 + $0x58] sm:$0xff] }
 0x231   : > { %v2146_v60 = vpop.permute.xlu1 %2145  ;;  %2006 = vmatprep.mubr.f32.mxu1 %v4071_v0 }
 0x232   : > { %v3807_v5 = vpack.c.bf16 %v2040_v58, %v2038_v52  ;;  %v3810_v6 = vpack.c.bf16 %v2039_v57, %v2037_v51  ;;  %v2148_v11 = vpop.permute.xlu0 %2147  ;;  %v491_v58 = vld [vmem:[%s5117_s8 + $0x8] sm:$0xff] }
 0x234   : > { %3719 = vmatmul.mubr.msk.f32.gmra.mrb[2].mxu1 %vm1587_vm15, %v3636_v62  ;;  %3809 = vmatprep.subr.msk.bf16.mxu1 %vm4615_vm14, %v3807_v5 }
 0x235   : > { %v2150_v12 = vpop.permute.xlu1 %2149  ;;  %3812 = vmatpush1.bf16.msk.msra.mxu1 %vm4615_vm14, %v3810_v6  ;;  %2012 = vmatprep.mubr.f32.mxu1 %v4071_v0  ;;  %v3644_v6 = vld [vmem:[%s5116_s7 + $0x78] sm:$0xff] }
 0x236   : > { %v2153_v14 = vsel %vm1101_vm6, %v2146_v60, %v2150_v12  ;;  %v2155_v17 = vsel %vm1101_vm6, %v2150_v12, %v2146_v60  ;;  %v2152_v20 = vpop.permute.xlu0 %2151 }
 0x237   : > { %v2157_v22 = vmul.f32 %v2153_v14, %v4370_v1  ;;  %v2158_v23 = vmul.f32 %v2155_v17, %v4348_v55  ;;  %v2154_v24 = vsel %vm1101_vm6, %v2148_v11, %v2152_v20  ;;  %v2156_v25 = vsel %vm1101_vm6, %v2152_v20, %v2148_v11 }
 0x238   : > { %v2159_v26 = vmul.f32 %v2154_v24, %v4370_v1  ;;  %v2160_v27 = vmul.f32 %v2156_v25, %v4348_v55  ;;  %3720 = vmatmul.mubr.msk.f32.gmra.mrb[4].mxu1 %vm1587_vm15, %v3637_v13 }
 0x239   : > { %v2266_v28 = vpop.permute.xlu1 %2265  ;;  %2120 = vmatprep.mubr.f32.mxu1 %v4071_v0 }
 0x23a   : > { %v3813_v32 = vpack.c.bf16 %v2160_v27, %v2158_v23  ;;  %v3816_v35 = vpack.c.bf16 %v2159_v26, %v2157_v22  ;;  %v2268_v36 = vpop.permute.xlu0 %2267  ;;  %v3645_v23 = vld [vmem:[%s5116_s7 + $0x80] sm:$0xff] }
 0x23c   : > { %3723 = vmatmul.mubr.msk.f32.vlgmr.msra.gmra.mrb[0].mxu1 %vm1587_vm15, %v3638_v29  ;;  %3815 = vmatprep.subr.msk.bf16.mxu1 %vm4615_vm14, %v3813_v32  ;;  %v3646_v29 = vld [vmem:[%s5116_s7 + $0x88] sm:$0xff] }
 0x23d   : > { %v2270_v37 = vpop.permute.xlu1 %2269  ;;  %3818 = vmatpush1.bf16.msk.msra.mxu1 %vm4615_vm14, %v3816_v35  ;;  %2126 = vmatprep.mubr.f32.mxu1 %v4071_v0 }
 0x23e   : > { %v2275_v43 = vsel %vm1214_vm7, %v2270_v37, %v2266_v28  ;;  %v2272_v45 = vpop.permute.xlu0 %2271  ;;  %v2273_v49 = vsel %vm1214_vm7, %v2266_v28, %v2270_v37 }
 0x23f   : > { %v2278_v47 = vmul.f32 %v2275_v43, %v4376_v3  ;;  %v2276_v48 = vsel %vm1214_vm7, %v2272_v45, %v2268_v36  ;;  %v2274_v50 = vsel %vm1214_vm7, %v2268_v36, %v2272_v45  ;;  %v2277_v60 = vmul.f32 %v2273_v49, %v4398_v19 }
 0x240   : > { %v2280_v51 = vmul.f32 %v2276_v48, %v4376_v3  ;;  %3724 = vmatmul.mubr.msk.f32.gmra.mrb[2].mxu1 %vm1587_vm15, %v3639_v39  ;;  %2627 = vperm.xlu1 %3994, %v490_v41   ;;  %v2279_v62 = vmul.f32 %v2274_v50, %v4398_v19 }
 0x241   : > { %v2386_v52 = vpop.permute.xlu1 %2385  ;;  %2637 = vperm.xlu0 %3993, %v492_v46   ;;  %2132 = vmatprep.mubr.f32.mxu1 %v4071_v0  ;;  %v3647_v46 = vld [vmem:[%s5116_s7 + $0x90] sm:$0xff] }
 0x242   : > { %v3819_v56 = vpack.c.bf16 %v2280_v51, %v2278_v47  ;;  %v2388_v57 = vpop.permute.xlu0 %2387  ;;  %v3822_v13 = vpack.c.bf16 %v2279_v62, %v2277_v60  ;;  %v3648_v51 = vld [vmem:[%s5116_s7 + $0x98] sm:$0xff] }
 0x244   : > { %3725 = vmatmul.mubr.msk.f32.gmra.mrb[4].mxu1 %vm1587_vm15, %v3640_v54  ;;  %3821 = vmatprep.subr.msk.bf16.mxu1 %vm4615_vm14, %v3819_v56 }
 0x245   : > { %2632 = vperm.xlu1 %3994, %v491_v58   ;;  %v2390_v5 = vpop.permute.xlu1 %2389  ;;  %2240 = vmatprep.mubr.f32.mxu1 %v4071_v0  ;;  %v3649_v58 = vld [vmem:[%s5116_s7 + $0xa0] sm:$0xff] }
 0x246   : > { %v2395_v11 = vsel %vm1327_vm8, %v2390_v5, %v2386_v52  ;;  %v2392_v12 = vpop.permute.xlu0 %2391  ;;  %v2393_v26 = vsel %vm1327_vm8, %v2386_v52, %v2390_v5 }
 0x247   : > { %v2398_v14 = vmul.f32 %v2395_v11, %v4404_v21  ;;  %v2396_v17 = vsel %vm1327_vm8, %v2392_v12, %v2388_v57  ;;  %v2394_v27 = vsel %vm1327_vm8, %v2388_v57, %v2392_v12  ;;  %v2397_v36 = vmul.f32 %v2393_v26, %v4426_v31  ;;  %v3650_v12 = vld [vmem:[%s5116_s7 + $0xa8] sm:$0xff] }
 0x248   : > { %v2400_v20 = vmul.f32 %v2396_v17, %v4404_v21  ;;  %3728 = vmatmul.mubr.msk.f32.vlgmr.msra.gmra.mrb[0].mxu1 %vm1587_vm15, %v3644_v6  ;;  %v2399_v37 = vmul.f32 %v2394_v27, %v4426_v31 }
 0x249   : > { %3824 = vmatpush1.bf16.msk.msra.mxu1 %vm4615_vm14, %v3822_v13  ;;  %v2506_v22 = vpop.permute.xlu1 %2505  ;;  %2246 = vmatprep.mubr.f32.mxu1 %v4071_v0 }
 0x24a   : > { %v3825_v24 = vpack.c.bf16 %v2400_v20, %v2398_v14  ;;  %v2508_v25 = vpop.permute.xlu0 %2507  ;;  %v3828_v49 = vpack.c.bf16 %v2399_v37, %v2397_v36  ;;  %v3652_v37 = vld [vmem:[%s5116_s7 + $0xb8] sm:$0xff] }
 0x24c   : > { %3729 = vmatmul.mubr.msk.f32.gmra.mrb[2].mxu1 %vm1587_vm15, %v3645_v23  ;;  %3827 = vmatprep.subr.msk.bf16.mxu1 %vm4615_vm14, %v3825_v24 }
 0x24d   : > { %v2510_v28 = vpop.permute.xlu1 %2509  ;;  %2252 = vmatprep.mubr.f32.mxu1 %v4071_v0 }
 0x24e   : > { %v2515_v32 = vsel %vm1440_vm9, %v2510_v28, %v2506_v22  ;;  %v2512_v35 = vpop.permute.xlu0 %2511  ;;  %v2513_v54 = vsel %vm1440_vm9, %v2506_v22, %v2510_v28  ;;  %v3651_v22 = vld [vmem:[%s5116_s7 + $0xb0] sm:$0xff] }
 0x24f   : > { %v2518_v39 = vmul.f32 %v2515_v32, %v4432_v34  ;;  %v2516_v41 = vsel %vm1440_vm9, %v2512_v35, %v2508_v25  ;;  %v2514_v56 = vsel %vm1440_vm9, %v2508_v25, %v2512_v35  ;;  %v2517_v62 = vmul.f32 %v2513_v54, %v4450_v40  ;;  %v3654_v54 = vld [vmem:[%s5116_s7 + $0xc8] sm:$0xff] }
 0x250   : > { %v2520_v43 = vmul.f32 %v2516_v41, %v4432_v34  ;;  %3730 = vmatmul.mubr.msk.f32.gmra.mrb[4].mxu1 %vm1587_vm15, %v3646_v29  ;;  %v2519_v5 = vmul.f32 %v2514_v56, %v4450_v40  ;;  %v438_v56 = vld [vmem:[%s5116_s7 + $0x10] sm:$0xff] }
 0x251   : > { %v2647_v45 = vpop.permute.xlu1 %2646  ;;  %2360 = vmatprep.mubr.f32.mxu1 %v4071_v0 }
 0x252   : > { %v3831_v47 = vpack.c.bf16 %v2520_v43, %v2518_v39  ;;  %v2649_v48 = vpop.permute.xlu0 %2648  ;;  %v3834_v17 = vpack.c.bf16 %v2519_v5, %v2517_v62  ;;  %v3641_v5 = vld [vmem:[%s5116_s7 + $0x60] sm:$0xff] }
 0x253   : > { %v2650_v6 = vsel %vm564_vm0, %v2647_v45, %v2649_v48 }
 0x254   : > { %3733 = vmatmul.mubr.msk.f32.vlgmr.msra.gmra.mrb[0].mxu1 %vm1587_vm15, %v3647_v46  ;;  %v2653_v13 = vmul.f32 %v2650_v6, %v4253_v16  ;;  %v2651_v46 = vsel %vm564_vm0, %v2649_v48, %v2647_v45  ;;  %v3653_v45 = vld [vmem:[%s5116_s7 + $0xc0] sm:$0xff] }
 0x255   : > { %3830 = vmatpush1.bf16.msk.msra.mxu1 %vm4615_vm14, %v3828_v49  ;;  %v4751_v50 = vpop.permute.xlu1 %2813  ;;  %2366 = vmatprep.mubr.f32.mxu1 %v4071_v0  ;;  %v436_v49 = vld [vmem:[%s5116_s7] sm:$0xff]  ;;  %v2652_v48 = vmul.f32 %v2651_v46, %v4250_v15 }
 0x256   : > { %3833 = vmatprep.subr.msk.bf16.mxu1 %vm4615_vm14, %v3831_v47  ;;  %v4759_v52 = vpop.permute.xlu0 %2815 }
 0x258   : > { %3734 = vmatmul.mubr.msk.f32.gmra.mrb[2].mxu1 %vm1587_vm15, %v3648_v51 }
 0x259   : > { %v4766_v57 = vpop.permute.xlu1 %2903  ;;  %2372 = vmatprep.mubr.f32.mxu1 %v4071_v0 }
 0x25a   : > { %v4772_v60 = vpop.permute.xlu0 %2905 }
 0x25b   : > { %v2907_v38 = vsel %vm875_vm4, %v4766_v57, %v4772_v60 }
 0x25c   : > { %3735 = vmatmul.mubr.msk.f32.gmra.mrb[4].mxu1 %vm1587_vm15, %v3649_v58  ;;  %v3655_v58 = vld [vmem:[%s5116_s7 + $0xd0] sm:$0xff] }
 0x25d   : > { %v1572_v11 = vpop.permute.xlu1 %1571  ;;  %2480 = vmatprep.mubr.f32.mxu1 %v4071_v0 }
 0x25e   : > { %v1574_v14 = vpop.permute.xlu0 %1573 }
 0x260   : > { %3738 = vmatmul.mubr.msk.f32.vlgmr.msra.gmra.mrb[0].mxu1 %vm1587_vm15, %v3650_v12 }
 0x261   : > { %3836 = vmatpush1.bf16.msk.msra.mxu1 %vm4615_vm14, %v3834_v17  ;;  %v1576_v20 = vpop.permute.xlu1 %1575  ;;  %2486 = vmatprep.mubr.f32.mxu1 %v4071_v0 }
 0x262   : > { %v1579_v23 = vsel %vm564_vm0, %v1572_v11, %v1576_v20  ;;  %v1581_v24 = vsel %vm564_vm0, %v1576_v20, %v1572_v11  ;;  %v1578_v25 = vpop.permute.xlu0 %1577  ;;  %3746 = vmatprep.subr.msk.mxu1 %vm507_vm11, %v2653_v13 }
 0x263   : > { %v1583_v26 = vmul.f32 %v1581_v24, %v4250_v15  ;;  %v1584_v27 = vmul.f32 %v1579_v23, %v4253_v16  ;;  %v1580_v28 = vsel %vm564_vm0, %v1574_v14, %v1578_v25  ;;  %v1582_v29 = vsel %vm564_vm0, %v1578_v25, %v1574_v14  ;;  %v3642_v25 = vld [vmem:[%s5116_s7 + $0x68] sm:$0xff] }
 0x264   : > { %v1585_v32 = vmul.f32 %v1582_v29, %v4250_v15  ;;  %v1586_v35 = vmul.f32 %v1580_v28, %v4253_v16  ;;  %3739 = vmatmul.mubr.msk.f32.gmra.mrb[2].mxu1 %vm1587_vm15, %v3651_v22  ;;  %v3789_v16 = vpack.c.bf16 %v4490_v2, %v4488_v63  ;;  %v3792_v2 = vpack.c.bf16 %v4482_v61, %v4480_v59  ;;  %v437_v15 = vld [vmem:[%s5116_s7 + $0x8] sm:$0xff]  ;;  %v471_v28 = vld [vmem:[%s5118_s9] sm:$0xf] }
 0x265   : > { %v4805_v36 = vpop.permute.xlu1 %2993  ;;  %2492 = vmatprep.mubr.f32.mxu1 %v4071_v0  ;;  %v2817_v22 = vsel %vm762_vm1, %v4751_v50, %v4759_v52  ;;  %vm2654_vm0 = vcmask 31744  }
 0x266   : > { %v3783_v39 = vpack.c.bf16 %v1586_v35, %v1584_v27  ;;  %v3786_v41 = vpack.c.bf16 %v1585_v32, %v1583_v26  ;;  %v4811_v43 = vpop.permute.xlu0 %2995  ;;  %v2820_v29 = vmul.f32 %v2817_v22, %v4257_v18  ;;  %v3643_v32 = vld [vmem:[%s5116_s7 + $0x70] sm:$0xff]  ;;  %v3632_v35 = vld [vmem:[%s5116_s7 + $0x18] sm:$0xff] }
 0x268   : > { %3785 = vmatprep.subr.msk.bf16.mxu0 %vm4615_vm14, %v3783_v39  ;;  %3740 = vmatmul.mubr.msk.f32.gmra.mrb[4].mxu1 %vm1587_vm15, %v3652_v37  ;;  %v3633_v39 = vld [vmem:[%s5116_s7 + $0x20] sm:$0xff] }
 0x269   : > { %v4820_v47 = vpop.permute.xlu1 %3083  ;;  %3788 = vmatpush1.bf16.msk.msra.mxu0 %vm4615_vm14, %v3786_v41  ;;  %2600 = vmatprep.mubr.f32.mxu1 %v4071_v0  ;;  %v3634_v41 = vld [vmem:[%s5116_s7 + $0x28] sm:$0xff] }
 0x26a   : > { %3791 = vmatprep.subr.msk.bf16.mxu0 %vm4615_vm14, %v3789_v16  ;;  %v4834_v63 = vpop.permute.xlu0 %3085  ;;  %v2998_v16 = vsel %vm988_vm5, %v4811_v43, %v4805_v36 }
 0x26c   : > { %3703 = vmatmul.mubr.msk.f32.vlgmr.msra.gmra.mrb[4].mxu0 %vm1587_vm15, %v436_v49  ;;  %3743 = vmatmul.mubr.msk.f32.vlgmr.msra.gmra.mrb[0].mxu1 %vm1587_vm15, %v3653_v45  ;;  %v3657_v49 = vld [vmem:[%s5118_s9 + $0x8] sm:$0xf] }
 0x26d   : > { %v4840_v51 = vpop.permute.xlu1 %3173  ;;  %3794 = vmatpush1.bf16.msk.msra.mxu0 %vm4615_vm14, %v3792_v2  ;;  %1674 = vmatprep.mubr.f32.mxu0 %v4071_v0 }
 0x26e   : > { %v4851_v59 = vpop.permute.xlu0 %3175  ;;  %2606 = vmatprep.mubr.f32.mxu1 %v4071_v0  ;;  %3747 = vmatpush1.msk.msra.mxu1 %vm507_vm11, %v2652_v48 }
 0x26f   : > { %3749 = vmatprep.subr.msk.mxu1 %vm507_vm11, %v4545_v4 }
 0x270   : > { %3704 = vmatmul.mubr.msk.f32.gmra.mrb[6].mxu0 %vm1587_vm15, %v437_v15  ;;  %3744 = vmatmul.mubr.msk.f32.gmra.mrb[2].mxu1 %vm1587_vm15, %v3654_v54 }
 0x271   : > { %v1786_v61 = vpop.permute.xlu1 %1785  ;;  %1680 = vmatprep.mubr.f32.mxu0 %v4071_v0  ;;  %2612 = vmatprep.mubr.f32.mxu1 %v4071_v0 }
 0x272   : > { %v1788_v62 = vpop.permute.xlu0 %1787 }
 0x274   : > { %3705 = vmatmul.mubr.msk.f32.gmra.mrb[8].mxu0 %vm1587_vm15, %v438_v56  ;;  %3745 = vmatmul.mubr.msk.f32.gmra.mrb[4].mxu1 %vm1587_vm15, %v3655_v58 }
 0x275   : > { %v1790_v4 = vpop.permute.xlu1 %1789  ;;  %1766 = vmatprep.mubr.f32.mxu0 %v4071_v0  ;;  %2728 = vmatprep.mubr.f32.mxu1 %v4071_v0 }
 0x276   : > { %v1793_v6 = vsel %vm762_vm1, %v1786_v61, %v1790_v4  ;;  %v1795_v11 = vsel %vm762_vm1, %v1790_v4, %v1786_v61  ;;  %v1792_v12 = vpop.permute.xlu0 %1791 }
 0x277   : > { %v1797_v13 = vmul.f32 %v1795_v11, %v4280_v30  ;;  %v1798_v14 = vmul.f32 %v1793_v6, %v4257_v18  ;;  %v1794_v17 = vsel %vm762_vm1, %v1788_v62, %v1792_v12  ;;  %v1796_v20 = vsel %vm762_vm1, %v1792_v12, %v1788_v62 }
 0x278   : > { %v1799_v23 = vmul.f32 %v1796_v20, %v4280_v30  ;;  %v1800_v24 = vmul.f32 %v1794_v17, %v4257_v18  ;;  %3708 = vmatmul.mubr.msk.f32.vlgmr.msra.gmra.mrb[4].mxu0 %vm1587_vm15, %v3641_v5  ;;  %v2818_v18 = vsel %vm762_vm1, %v4759_v52, %v4751_v50  ;;  %v3659_v50 = vld [vmem:[%s5118_s9 + $0x10] sm:$0xf]  ;;  %v2910_v52 = vmul.f32 %v2907_v38, %v4292_v33 }
 0x279   : > { %1772 = vmatprep.mubr.f32.mxu0 %v4071_v0  ;;  %v2819_v37 = vmul.f32 %v2818_v18, %v4280_v30  ;;  %v2908_v30 = vsel %vm875_vm4, %v4772_v60, %v4766_v57  ;;  %v2997_v33 = vsel %vm988_vm5, %v4805_v36, %v4811_v43  ;;  %v3656_v57 = vld [vmem:[%s5118_s9 + $0x4] sm:$0xf]  ;;  %v3087_v36 = vsel %vm1101_vm6, %v4820_v47, %v4834_v63  ;;  %v3658_v43 = vld [vmem:[%s5118_s9 + $0xc] sm:$0xf]  ;;  %v3264_v2 = vpop.permute.xlu1 %3263 }
 0x27a   : > { %v3795_v26 = vpack.c.bf16 %v1800_v24, %v1798_v14  ;;  %v3798_v27 = vpack.c.bf16 %v1799_v23, %v1797_v13  ;;  %v2909_v46 = vmul.f32 %v2908_v30, %v4314_v42  ;;  %v3000_v60 = vmul.f32 %v2997_v33, %v4320_v44  ;;  %v3266_v15 = vpop.permute.xlu0 %3265 }
 0x27b   : > { %v3088_v42 = vsel %vm1101_vm6, %v4834_v63, %v4820_v47  ;;  %v2999_v44 = vmul.f32 %v2998_v16, %v4342_v53  ;;  %v3178_v53 = vsel %vm1214_vm7, %v4851_v59, %v4840_v51  ;;  %v3177_v47 = vsel %vm1214_vm7, %v4840_v51, %v4851_v59  ;;  %v3660_v63 = vld [vmem:[%s5118_s9 + $0x14] sm:$0xf] }
 0x27c   : > { %3709 = vmatmul.mubr.msk.f32.gmra.mrb[6].mxu0 %vm1587_vm15, %v3642_v25  ;;  %3797 = vmatprep.subr.msk.bf16.mxu0 %vm4615_vm14, %v3795_v26  ;;  %v3090_v45 = vmul.f32 %v3088_v42, %v4348_v55  ;;  %v3089_v55 = vmul.f32 %v3087_v36, %v4370_v1  ;;  %v3180_v48 = vmul.f32 %v3178_v53, %v4376_v3 }
 0x27d   : > { %3748 = vmatmul.mubr.msk.f32.vlgmr.msra.gmra.mrb[4].mxu1 %vm2654_vm0, %v471_v28  ;;  %3800 = vmatpush1.bf16.msk.msra.mxu0 %vm4615_vm14, %v3798_v27  ;;  %v3268_v1 = vsel %vm1327_vm8, %v3266_v15, %v3264_v2  ;;  %v3179_v3 = vmul.f32 %v3177_v47, %v4398_v19  ;;  %v3354_v61 = vpop.permute.xlu1 %3353  ;;  %v3267_v51 = vsel %vm1327_vm8, %v3264_v2, %v3266_v15  ;;  %v493_v47 = vld [vmem:[%s5113_s4] sm:$0xff] }
 0x27e   : > { %1778 = vmatprep.mubr.f32.mxu0 %v4071_v0  ;;  %3750 = vmatpush1.msk.msra.mxu1 %vm507_vm11, %v4537_v7  ;;  %v3270_v54 = vmul.f32 %v3268_v1, %v4404_v21  ;;  %v3356_v56 = vpop.permute.xlu0 %3355  ;;  %v3269_v59 = vmul.f32 %v3267_v51, %v4426_v31  ;;  %v3661_v21 = vld [vmem:[%s5118_s9 + $0x18] sm:$0xf]  ;;  %v3662_v31 = vld [vmem:[%s5118_s9 + $0x1c] sm:$0xf] }
 0x27f   : > { %2806 = vmatprep.mubr.f32.mxu1 %v4071_v0  ;;  %3752 = vmatprep.subr.msk.mxu1 %vm507_vm11, %v2820_v29  ;;  %v3358_v19 = vsel %vm1440_vm9, %v3356_v56, %v3354_v61  ;;  %v3357_v62 = vsel %vm1440_vm9, %v3354_v61, %v3356_v56 }
 0x280   : > { %3710 = vmatmul.mubr.msk.f32.gmra.mrb[8].mxu0 %vm1587_vm15, %v3643_v32  ;;  %v3360_v58 = vmul.f32 %v3358_v19, %v4432_v34  ;;  %v3359_v4 = vmul.f32 %v3357_v62, %v4450_v40 }
 0x281   : > { %1880 = vmatprep.mubr.f32.mxu0 %v4071_v0 }
 0x284   : > { %3713 = vmatmul.mubr.msk.f32.vlgmr.msra.gmra.mrb[4].mxu0 %vm1587_vm15, %v3632_v35 }
 0x285   : > { %3751 = vmatmul.mubr.msk.f32.vlgmr.msra.gmra.mrb[4].mxu1 %vm2654_vm0, %v3659_v50  ;;  %1886 = vmatprep.mubr.f32.mxu0 %v4071_v0 }
 0x286   : > { %3753 = vmatpush1.msk.msra.mxu1 %vm507_vm11, %v2819_v37  ;;  %2894 = vmatprep.mubr.f32.mxu1 %v4071_v0 }
 0x287   : > { %3755 = vmatprep.subr.msk.mxu1 %vm507_vm11, %v2910_v52 }
 0x288   : > { %3714 = vmatmul.mubr.msk.f32.gmra.mrb[6].mxu0 %vm1587_vm15, %v3633_v39 }
 0x289   : > { %1892 = vmatprep.mubr.f32.mxu0 %v4071_v0 }
 0x28c   : > { %3715 = vmatmul.mubr.msk.f32.gmra.mrb[8].mxu0 %vm1587_vm15, %v3634_v41 }
 0x28d   : > { %3754 = vmatmul.mubr.msk.f32.vlgmr.msra.gmra.mrb[4].mxu1 %vm2654_vm0, %v3656_v57 }
 0x28e   : > { %3756 = vmatpush1.msk.msra.mxu1 %vm507_vm11, %v2909_v46  ;;  %2984 = vmatprep.mubr.f32.mxu1 %v4071_v0 }
 0x28f   : > { %3758 = vmatprep.subr.msk.mxu1 %vm507_vm11, %v3000_v60 }
 0x295   : > { %3757 = vmatmul.mubr.msk.f32.vlgmr.msra.gmra.mrb[4].mxu1 %vm2654_vm0, %v3657_v49 }
 0x296   : > { %3759 = vmatpush1.msk.msra.mxu1 %vm507_vm11, %v2999_v44  ;;  %3074 = vmatprep.mubr.f32.mxu1 %v4071_v0 }
 0x297   : > { %3761 = vmatprep.subr.msk.mxu1 %vm507_vm11, %v3090_v45 }
 0x29d   : > { %3760 = vmatmul.mubr.msk.f32.vlgmr.msra.gmra.mrb[4].mxu1 %vm2654_vm0, %v3658_v43 }
 0x29e   : > { %3762 = vmatpush1.msk.msra.mxu1 %vm507_vm11, %v3089_v55  ;;  %3164 = vmatprep.mubr.f32.mxu1 %v4071_v0 }
 0x29f   : > { %3764 = vmatprep.subr.msk.mxu1 %vm507_vm11, %v3180_v48 }
 0x2a5   : > { %3763 = vmatmul.mubr.msk.f32.vlgmr.msra.gmra.mrb[4].mxu1 %vm2654_vm0, %v3660_v63 }
 0x2a6   : > { %3765 = vmatpush1.msk.msra.mxu1 %vm507_vm11, %v3179_v3  ;;  %3254 = vmatprep.mubr.f32.mxu1 %v4071_v0 }
 0x2a7   : > { %3767 = vmatprep.subr.msk.mxu1 %vm507_vm11, %v3270_v54 }
 0x2ad   : > { %3766 = vmatmul.mubr.msk.f32.vlgmr.msra.gmra.mrb[4].mxu1 %vm2654_vm0, %v3661_v21 }
 0x2ae   : > { %3768 = vmatpush1.msk.msra.mxu1 %vm507_vm11, %v3269_v59  ;;  %3344 = vmatprep.mubr.f32.mxu1 %v4071_v0 }
 0x2af   : > { %3770 = vmatprep.subr.msk.mxu1 %vm507_vm11, %v3360_v58 }
 0x2b5   : > { %3769 = vmatmul.mubr.msk.f32.vlgmr.msra.gmra.mrb[4].mxu1 %vm2654_vm0, %v3662_v31 }
 0x2b6   : > { %3771 = vmatpush1.msk.msra.mxu1 %vm507_vm11, %v3359_v4  ;;  %3434 = vmatprep.mubr.f32.mxu1 %v4071_v0  ;;  %v3664_v4 = vld [vmem:[%s5113_s4 + $0x8] sm:$0xff] }
 0x2b8   : > { %v528_v34 = vpop.xlane.xlu0 %527 }
 0x2b9   : > { %v529_v5 = vrot.slane %v528_v34, 4 }
 0x2bb   : > { %v530_v6 = vadd.f32 %v529_v5, %v528_v34 }
 0x2bc   : > { %v512_v11 = vpop.xlane.xlu1 %511 }
 0x2bd   : > { %3772 = vmatmul.mubr.msk.f32.vlgmr.msra.gmra.mrb[4].mxu1 %vm2654_vm0, %v3663_v8  ;;  %v531_v40 = vrot.slane %v530_v6, 2  ;;  %v513_v12 = vrot.slane %v512_v11, 4 }
 0x2bf   : > { %v514_v13 = vadd.f32 %v513_v12, %v512_v11  ;;  %v532_v14 = vadd.f32 %v531_v40, %v530_v6 }
 0x2c0   : > { %v2638_v46 = vpop.permute.xlu0 %2637  ;;  %v2628_v63 = vpop.permute.xlu1 %2627 }
 0x2c1   : > { %v515_v17 = vrot.slane %v514_v13, 2  ;;  %v533_v20 = vrot.slane %v532_v14, 1 }
 0x2c3   : > { %v516_v22 = vadd.f32 %v515_v17, %v514_v13  ;;  %v534_v24 = vadd.f32 %v533_v20, %v532_v14 }
 0x2c4   : > { %v2633_v34 = vpop.permute.xlu1 %2632 }
 0x2c5   : > { %v517_v23 = vrot.slane %v516_v22, 1 }
 0x2c7   : > { %v518_v0 = vadd.f32 %v517_v23, %v516_v22 }
 0x2c9   : > { %3937 = vpush %v518_v0 }
 0x2ca   : > { %3939 = vpush %v534_v24 }
 0x2fa   : > { %s3938_s26 = spop %3937 }
 0x2fb   : > { %s5038_s28 = smul.f32 0.0009765625, %s3938_s26  ;;  %s3940_s12 = spop %3939 }
 0x2fc   : > { %s541_s18 = smul.f32 0.0009765625, %s3940_s12  ;;  %s389_s26 = scalar_lea.vmem %s5111_s2, %s3606_s30 }
 0x2fd   : > { %s542_s20 = smul.f32 %s5038_s28, %s5038_s28  ;;  %v503_v53 = vld [vmem:[%s389_s26] sm:$0x3]  ;;  %v550_v61 = vstv %s5038_s28  ;;  %s3603_s28 = sshll.u32 %s378_s25, 3 }
 0x2fe   : > { %vm3445_vm1 = vcmp.gt.f32.partialorder %v503_v53, 0.0  ;;  %s3782_s30 = sshll.u32 %s4159_s17, 7  ;;  %s380_s11 = scalar_lea.vmem [#allocation2], %s3603_s28 }
 0x2ff   : > { %s543_s21 = ssub.f32 %s541_s18, %s542_s20  ;;  %v3446_v15 = vsel %vm3445_vm1, 1.0, %v503_v53  ;;  %s3516_s29 = sshll.u32 %s380_s11, 4  ;;  %s5067_s29 = int_to_ptr.vmem [resolvable:$true] %s3516_s29 }
 0x300   : > { %v3459_v3 = vsub.f32 1.0, %v3446_v15  ;;  %v3477_v19 = vrot.slane %v3446_v15, %v4237_v9  ;;  %v3481_v58 = vrot.slane %v3446_v15, %v4240_v10  ;;  %s5065_s18 = scalar_lea.hbm %s5119_s10, %s3782_s30  ;;  %s3502_s20 = scalar_lea.sflag [#allocation3], %s378_s25 }
 0x301   : > { %s544_s27 = sadd.f32 1e-05, %s543_s21  ;;  %s4007_s21 = scalar_lea.vmem %s5067_s29, 128 }
 0x302   : > { %v3464_v56 = vrot.slane %v3459_v3, %v4237_v9  ;;  %v3468_v51 = vrot.slane %v3459_v3, %v4240_v10  ;;  %p4008_p11 = scmp.ne.s32.totalorder %s5067_s29, %s4007_s21  ;;  %s4082_s17 = smov [#allocation2]  }
 0x303   : > { %v545_v25 = vstv %s544_s27  ;;  %s4011_s27 = sshll.u32 %s4082_s17, 4  ;;  %s4012_s27 = int_to_ptr.vmem [resolvable:$false] %s4011_s27 }
 0x304   : > { %3997 = vrsqrt.f32 %v545_v25  ;;  %p4009_p12 = pnand %p4008_p11, %p4176_p5  ;;  %s4013_s28 = scalar_lea.vmem %s4012_s27, 256 }
 0x305   : > { %p4014_p0 = scmp.lt.s32.totalorder %s5067_s29, %s4012_s27  ;;  %p4015_p1 = scmp.lt.s32.totalorder %s4013_s28, %s4007_s21 }
 0x306   : > { %p4010_p13 = pneg %p4009_p12 }
 0x307   : > { %p4016_p2 = por %p4015_p1, %p4014_p0 }
 0x309   : > { %p4017_p3 = pnand %p4016_p2, %p4010_p13 }
 0x30e   : > { %v3998_v26 = vpop.eup %3997 }
 0x30f   : > { %3941 = vpush %v3998_v26 }
 0x33f   : > { %v2602_v27 = vpop.f32.mrb[0].mxu1 }
 0x340   : > { %v2604_v28 = vpop.f32.mrb[1].mxu1  ;;  %s3942_s12 = spop %3941 }
 0x341   : > { %v548_v1 = vstv %s3942_s12 }
 0x342   : > { %v549_v54 = vmul.f32 %v548_v1, %v493_v47 }
 0x343   : > { %v2608_v29 = vpop.f32.mrb[2].mxu1 }
 0x344   : > { %v2610_v32 = vpop.f32.mrb[3].mxu1  ;;  %v551_v21 = vmul.f32 %v550_v61, %v549_v54  ;;  %v553_v11 = vmul.f32 %v549_v54, %v4537_v7 }
 0x346   : > { %v552_v13 = vsub.f32 %v3664_v4, %v551_v21 }
 0x348   : > { %v554_v23 = vadd.f32 %v553_v11, %v552_v13 }
 0x357   : > { %v1882_v18 = vpop.f32.mrb[4].mxu0 }
 0x358   : > { %v3837_v38 = vadd.f32 %v2602_v27, %v1882_v18  ;;  %v1884_v35 = vpop.f32.mrb[5].mxu0 }
 0x359   : > { %v3838_v37 = vadd.f32 %v2604_v28, %v1884_v35 }
 0x35a   : > { %v2640_v8 = vadd.f32 %v3837_v38, %v2628_v63 }
 0x35b   : > { %v1888_v50 = vpop.f32.mrb[6].mxu0  ;;  %v2641_v40 = vadd.f32 %v3838_v37, %v2628_v63 }
 0x35c   : > { %v3839_v52 = vadd.f32 %v2608_v29, %v1888_v50  ;;  %v1890_v39 = vpop.f32.mrb[7].mxu0 }
 0x35d   : > { %v3840_v30 = vadd.f32 %v2610_v32, %v1890_v39 }
 0x35e   : > { %v2642_v6 = vadd.f32 %v3839_v52, %v2633_v34 }
 0x35f   : > { %v1894_v33 = vpop.f32.mrb[8].mxu0  ;;  %v2643_v12 = vadd.f32 %v3840_v30, %v2633_v34 }
 0x360   : > { %v1896_v41 = vpop.f32.mrb[9].mxu0  ;;  %v3841_v57 = vadd.f32 %v2638_v46, %v1894_v33 }
 0x361   : > { %v3843_v60 = vadd.f32 %v2638_v46, %v1896_v41 }
 0x390   : > { %v3436_v16 = vpop.f32.mrb[4].mxu1 }
 0x391   : > { %v3842_v42 = vadd.f32 %v3841_v57, %v3436_v16  ;;  %v3438_v44 = vpop.f32.mrb[5].mxu1 }
 0x392   : > { %v3844_v49 = vadd.f32 %v3843_v60, %v3438_v44 }
 0x393   : > { %v3773_v45 = vmul.f32 -1.442695, %v3842_v42 }
 0x394   : > { %v3774_v36 = vmul.f32 -1.442695, %v3844_v49 }
 0x395   : > { %3999 = vpow2.f32 %v3773_v45 }
 0x396   : > { %4001 = vpow2.f32 %v3774_v36 }
 0x39f   : > { %v4000_v55 = vpop.eup %3999 }
 0x3a0   : > { %v4002_v43 = vpop.eup %4001  ;;  %v3453_v48 = vadd.f32 1.0, %v4000_v55 }
 0x3a1   : > { %v3454_v2 = vadd.f32 1.0, %v4002_v43 }
 0x3a2   : > { %4003 = vrcp.f32 %v3453_v48 }
 0x3a3   : > { %4005 = vrcp.f32 %v3454_v2 }
 0x3ac   : > { %v4004_v59 = vpop.eup %4003 }
 0x3ad   : > { %v4006_v62 = vpop.eup %4005  ;;  %v3471_v31 = vmul.f32 %v4004_v59, %v3464_v56 }
 0x3ae   : > { %v3472_v5 = vmul.f32 %v4006_v62, %v3468_v51 }
 0x3af   : > { %v3484_v9 = vadd.f32 %v3477_v19, %v3471_v31 }
 0x3b0   : > { %v3485_v10 = vadd.f32 %v3481_v58, %v3472_v5 }
 0x3b1   : > { %v3486_v14 = vmul.f32 %v3484_v9, %v2640_v8  ;;  %v3493_v17 = vmul.f32 %v3484_v9, %v2642_v6 }
 0x3b2   : > { %v3487_v20 = vmul.f32 %v3485_v10, %v2641_v40  ;;  %v3494_v22 = vmul.f32 %v3485_v10, %v2643_v12 }
 0x3b4   : > { %v3490_v24 = vcombine.low %v3486_v14, %v3487_v20  ;;  %v3497_v0 = vcombine.low %v3493_v17, %v3494_v22 }
 0x3b6   : > { %v3492_v7 = vmul.f32 %v3490_v24, %v554_v23 }
 0x3b8   : > { %v3499_v25 = vadd.f32 %v3497_v0, %v3492_v7 }
 0x3ba   : > { %3500 = vst [vmem:[%s380_s11] sm:$0xff] %v3499_v25 }
 0x3bb   : > { %4020 = shalt.err (!%p4017_p3)
}
 0x3bc   : > { %s4021_s25 = scalar_lea.hbm %s5065_s18, 128  ;;  %s4025_s26 = scalar_lea.hbm %s5119_s10, 256 }
 0x3bd   : > { %p4022_p4 = scmp.ne.s32.totalorder %s5065_s18, %s4021_s25  ;;  %p4026_p9 = scmp.lt.u32.totalorder %s5065_s18, %s5119_s10 }
 0x3be   : > { %p4027_p10 = scmp.lt.u32.totalorder %s4025_s26, %s4021_s25  ;;  %p4029_p12 = scmp.lt.u32.totalorder %s4021_s25, %s5065_s18 }
 0x3bf   : > { %p4023_p7 = pnand %p4022_p4, %p4176_p5 }
 0x3c0   : > { %p4028_p11 = por %p4027_p10, %p4026_p9 }
 0x3c1   : > { %p4024_p8 = pneg %p4023_p7 }
 0x3c2   : > { %p4030_p13 = por %p4029_p12, %p4028_p11 }
 0x3c4   : > { %p4031_p0 = pnand %p4030_p13, %p4024_p8 }
 0x3c6   : > { %4034 = shalt.err (!%p4031_p0)
}
 0x3c7   : > { %3943 = dma.vmem_to_hbm [thread:$0]  (%p4176_p5), %s5067_s29, 128, %s5065_s18, %s3502_s20  }
 0x3c8 PF: > { %p3949_p1 = scmp.ge.s32.totalorder %s4069_s16, 2  ;;  %s3528_s21 = sand.u32 1, %s4057_s13  }
 0x3c9   : > { %s3529_s27 = scalar_lea.sflag [#allocation3], %s3528_s21 }
 0x3ca   : > { %p3946_p2 = pnand %p3949_p1, %p4180_p6 }
 0x3cc   : > { %4052 = dma.done.wait (!%p3946_p2), %s3529_s27, 128  }
 0x3cd   : > { %4054 = vsyncadd (!%p3946_p2), %s3529_s27, 4294967168  ;;  %p20_p3 = scmp.ge.s32.totalorder %s4163_s19, 4   ;;  %s5138_s13 = smov %s4061_s14 }
 0x3ce   : > { %s5139_s14 = smov %s4065_s15  ;;  %s5140_s15 = smov %s4174_s22 }
 0x3cf   : > { %s5141_s16 = smov %s4163_s19  ;;  %22 = sbr.rel (!%p20_p3) target bundleno = 3 (0x3), region = 133 }
 0x3d6   :  { %3534 = vsyncpa [#allocation3], 1 }
 0x3d7   :  { %3536 = vsyncpa [#allocation3 + $0x1], 1 }

</bundles_post_ra>
